<compile_context>
chip_gen: v5e
topology: v5e:2x2
jax: 0.10.0
libtpu: 0.0.40
codegen_flags: <defaults>
</compile_context>

<pallas_src>
import jax
import jax.numpy as jnp
import numpy as np
from jax.experimental import pallas as pl
from jax.experimental.pallas import tpu as pltpu

IN_DIM = 10 * 10          # flattened seq_len * shape
K_PAD = 128               # IN_DIM padded to a full lane width
D_MODEL = 256
OUT_DIM = 3
OUT_PAD = 128             # output head padded to a full lane width
N_RES = 7


def _round_up(x, m):
    return ((x + m - 1) // m) * m


def _pick_tile(batch):
    """Adaptive batch tile.

    Small batch: exactly round_up(B, 16) rows -> single grid step, no wasted
    MXU streaming / writeback.  Large batch: largest of {1024, 512, 256} that
    still leaves >= 2 grid steps (v7x megacore split)."""
    b16 = _round_up(max(batch, 1), 16)
    if b16 <= 256:
        return b16
    for tm in (1024, 512, 256):
        if b16 >= 2 * tm:
            return tm
    return 256


def mlp_resnet_kernel(x_ref, wp_ref, bp_ref, wr_ref, br_ref, wo_ref, bo_ref,
                      o_ref, h_ref):
    # x_ref : (tm, 128)        bf16  (batch tile, K zero-padded 100 -> 128)
    # wp_ref: (128, 256)       bf16  projection weight (transposed vs torch)
    # bp_ref: (1, 256)         f32   projection bias
    # wr_ref: (7, 256, 256)    bf16  residual weights (transposed vs torch)
    # br_ref: (7, 1, 256)      f32   residual biases
    # wo_ref: (256, 128)       bf16  output weight, N zero-padded 3 -> 128
    # bo_ref: (1, 128)         f32   output bias,   N zero-padded 3 -> 128
    # o_ref : (tm, 128)        bf16  padded output tile (lane-dense store)
    # h_ref : (tm, 256)        f32   VMEM scratch carrying the residual stream

    # projection + ReLU  (bf16 x bf16 -> f32 on the MXU)
    h_ref[...] = jnp.maximum(
        jnp.dot(x_ref[...], wp_ref[...], preferred_element_type=jnp.float32)
        + bp_ref[...],
        0.0,
    )

    # 7 residual linear layers, statically unrolled; single scratch bounds the
    # activation live range.
    for i in range(N_RES):
        h = h_ref[...]
        h_ref[...] = jnp.maximum(
            jnp.dot(h.astype(jnp.bfloat16), wr_ref[i],
                    preferred_element_type=jnp.float32)
            + br_ref[i]
            + h,
            0.0,
        )
        # nn.Dropout(0.05) -> identity in eval mode.
        # TODO(synk): add pltpu.prng_random_bits-based dropout mask if
        #             training-mode semantics are ever required.

    # output head + ReLU; stored bf16 (lane-dense 128-wide unmasked store),
    # wrapper slices [:, :3] and casts back to f32.
    o_ref[...] = jnp.maximum(
        jnp.dot(h_ref[...].astype(jnp.bfloat16), wo_ref[...],
                preferred_element_type=jnp.float32)
        + bo_ref[...],
        0.0,
    ).astype(o_ref.dtype)


def init_params(key):
    """Deterministic PyTorch-style uniform(-1/sqrt(fan_in), 1/sqrt(fan_in)) init.

    Canonical f32 parameters, weights stored (in_features, out_features)
    (i.e. transposed vs torch's nn.Linear.weight)."""
    ks = jax.random.split(key, 8)

    def linear(k, fan_in, fan_out):
        kw, kb = jax.random.split(k)
        bound = 1.0 / jnp.sqrt(float(fan_in))
        w = jax.random.uniform(kw, (fan_in, fan_out), jnp.float32, -bound, bound)
        b = jax.random.uniform(kb, (1, fan_out), jnp.float32, -bound, bound)
        return w, b

    wp, bp = linear(ks[0], IN_DIM, D_MODEL)
    wr_list, br_list = [], []
    for i in range(N_RES):
        w, b = linear(ks[1 + i], D_MODEL, D_MODEL)
        wr_list.append(w)
        br_list.append(b)
    wr = jnp.stack(wr_list, axis=0)               # (7, 256, 256)
    br = jnp.stack(br_list, axis=0)               # (7, 1, 256)
    wo, bo = linear(jax.random.fold_in(key, 99), D_MODEL, OUT_DIM)
    return wp, bp, wr, br, wo, bo


def pack_params(params):
    """Pad to lane-dense shapes and cast matmul operands to bf16 (one-time glue)."""
    wp, bp, wr, br, wo, bo = params
    wp_p = jnp.zeros((K_PAD, D_MODEL), jnp.float32).at[:IN_DIM, :].set(wp)
    wo_p = jnp.zeros((D_MODEL, OUT_PAD), jnp.float32).at[:, :OUT_DIM].set(wo)
    bo_p = jnp.zeros((1, OUT_PAD), jnp.float32).at[:, :OUT_DIM].set(bo)
    return (
        wp_p.astype(jnp.bfloat16),     # (128, 256)
        bp,                            # (1, 256)   f32
        wr.astype(jnp.bfloat16),       # (7, 256, 256)
        br,                            # (7, 1, 256) f32
        wo_p.astype(jnp.bfloat16),     # (256, 128)
        bo_p,                          # (1, 128)   f32
    )


def mlp_2_10_resnet_forward(x, params):
    """x: (B, 10, 10) float32 -> (weight, offset_1, offset_2), each (B,)."""
    B = x.shape[0]
    xf = x.reshape(B, -1).astype(jnp.float32)                       # (B, 100)

    tm = _pick_tile(B)
    Bp = _round_up(max(B, 1), tm)

    # Pad batch to a multiple of the tile and K to a full lane width.
    x_pad = jnp.zeros((Bp, K_PAD), jnp.float32).at[:B, :IN_DIM].set(xf)
    x_pad = x_pad.astype(jnp.bfloat16)

    wp_p, bp, wr_p, br, wo_p, bo_p = pack_params(params)

    # Advisory cost estimate so XLA schedules surrounding pad/slice ops well.
    flops = 2 * Bp * (IN_DIM * D_MODEL + N_RES * D_MODEL * D_MODEL
                      + D_MODEL * OUT_DIM)
    weight_bytes = 2 * (K_PAD * D_MODEL + N_RES * D_MODEL * D_MODEL
                        + D_MODEL * OUT_PAD)            # bf16 weights
    bias_bytes = 4 * (D_MODEL + N_RES * D_MODEL + OUT_PAD)
    io_bytes = 2 * Bp * K_PAD + 2 * Bp * OUT_PAD        # bf16 in / bf16 out
    cost = pl.CostEstimate(flops=flops, transcendentals=0,
                           bytes_accessed=weight_bytes + bias_bytes + io_bytes)

    grid = (Bp // tm,)
    out = pl.pallas_call(
        mlp_resnet_kernel,
        out_shape=jax.ShapeDtypeStruct((Bp, OUT_PAD), jnp.bfloat16),
        grid=grid,
        in_specs=[
            pl.BlockSpec((tm, K_PAD), lambda i: (i, 0)),               # x tile
            pl.BlockSpec((K_PAD, D_MODEL), lambda i: (0, 0)),          # wp (resident)
            pl.BlockSpec((1, D_MODEL), lambda i: (0, 0)),              # bp (resident)
            pl.BlockSpec((N_RES, D_MODEL, D_MODEL), lambda i: (0, 0, 0)),  # wr
            pl.BlockSpec((N_RES, 1, D_MODEL), lambda i: (0, 0, 0)),    # br
            pl.BlockSpec((D_MODEL, OUT_PAD), lambda i: (0, 0)),        # wo (resident)
            pl.BlockSpec((1, OUT_PAD), lambda i: (0, 0)),              # bo (resident)
        ],
        out_specs=pl.BlockSpec((tm, OUT_PAD), lambda i: (i, 0)),
        scratch_shapes=[pltpu.VMEM((tm, D_MODEL), jnp.float32)],
        compiler_params=pltpu.CompilerParams(
            dimension_semantics=("parallel",)),
        cost_estimate=cost,
    )(x_pad, wp_p, bp, wr_p, br, wo_p, bo_p)

    out = out[:B, :OUT_DIM].astype(jnp.float32)
    return out[:, 0], out[:, 1], out[:, 2]


def reference_forward(x, params):
    """Pure-JAX reference emulating the kernel's bf16-in / f32-accumulate math
    (including the final bf16 output store)."""
    wp, bp, wr, br, wo, bo = params
    bf = jnp.bfloat16
    xf = x.reshape(x.shape[0], -1).astype(jnp.float32)
    h = jnp.dot(xf.astype(bf), wp.astype(bf),
                preferred_element_type=jnp.float32) + bp
    h = jnp.maximum(h, 0.0)
    for i in range(N_RES):
        y = jnp.dot(h.astype(bf), wr[i].astype(bf),
                    preferred_element_type=jnp.float32) + br[i]
        h = jnp.maximum(y + h, 0.0)
    y = jnp.dot(h.astype(bf), wo.astype(bf),
                preferred_element_type=jnp.float32) + bo
    y = jnp.maximum(y, 0.0).astype(bf).astype(jnp.float32)
    return y[:, 0], y[:, 1], y[:, 2]


def _check(x, params, rtol=1e-2, atol=1e-2):
    weight, offset_1, offset_2 = mlp_2_10_resnet_forward(x, params)
    jax.block_until_ready((weight, offset_1, offset_2))
    B = x.shape[0]
    assert weight.shape == (B,) and offset_1.shape == (B,) and offset_2.shape == (B,)
    rw, r1, r2 = reference_forward(x, params)
    np.testing.assert_allclose(np.asarray(weight), np.asarray(rw), rtol=rtol, atol=atol)
    np.testing.assert_allclose(np.asarray(offset_1), np.asarray(r1), rtol=rtol, atol=atol)
    np.testing.assert_allclose(np.asarray(offset_2), np.asarray(r2), rtol=rtol, atol=atol)


if __name__ == "__main__":
    key = jax.random.PRNGKey(0)
    k_x, k_x2, k_p = jax.random.split(key, 3)

    params = init_params(k_p)

    # Small-batch path: tm = 16, single grid step.
    x_small = jax.random.normal(k_x, (8, 10, 10), dtype=jnp.float32)
    _check(x_small, params)

    # Larger batch exercising the tiled (multi-step, "parallel") path.
    x_big = jax.random.normal(k_x2, (520, 10, 10), dtype=jnp.float32)
    _check(x_big, params)

    print("KERNEL_OK")
</pallas_src>

<mosaic_0001>
module attributes {stable_mosaic.version = 11 : i64} {
  func.func @mlp_resnet_kernel(%arg0: i32, %arg1: memref<16x128xbf16, #tpu.memory_space<vmem>>, %arg2: memref<128x256xbf16, #tpu.memory_space<vmem>>, %arg3: memref<1x256xf32, #tpu.memory_space<vmem>>, %arg4: memref<7x256x256xbf16, #tpu.memory_space<vmem>>, %arg5: memref<7x1x256xf32, #tpu.memory_space<vmem>>, %arg6: memref<256x128xbf16, #tpu.memory_space<vmem>>, %arg7: memref<1x128xf32, #tpu.memory_space<vmem>>, %arg8: memref<16x128xbf16, #tpu.memory_space<vmem>>, %arg9: memref<16x256xf32, #tpu.memory_space<vmem>>) attributes {dimension_semantics = [#tpu.dimension_semantics<parallel>], iteration_bounds = array<i64: 1>, scalar_prefetch = 0 : i64, scratch_operands = 1 : i64, tpu.core_type = #tpu.core_type<tc>, window_params = [{transform_indices = @transform_0, window_bounds = array<i64: 16, 128>}, {pipeline_mode = #tpu.pipeline_mode<synchronous>, transform_indices = @transform_1, window_bounds = array<i64: 128, 256>}, {pipeline_mode = #tpu.pipeline_mode<synchronous>, transform_indices = @transform_2, window_bounds = array<i64: 1, 256>}, {pipeline_mode = #tpu.pipeline_mode<synchronous>, transform_indices = @transform_3, window_bounds = array<i64: 7, 256, 256>}, {pipeline_mode = #tpu.pipeline_mode<synchronous>, transform_indices = @transform_4, window_bounds = array<i64: 7, 1, 256>}, {pipeline_mode = #tpu.pipeline_mode<synchronous>, transform_indices = @transform_5, window_bounds = array<i64: 256, 128>}, {pipeline_mode = #tpu.pipeline_mode<synchronous>, transform_indices = @transform_6, window_bounds = array<i64: 1, 128>}, {transform_indices = @transform_7, window_bounds = array<i64: 16, 128>}]} {
    %c0 = arith.constant 0 : index
    %c0_0 = arith.constant 0 : index
    %0 = vector.load %arg1[%c0, %c0_0] : memref<16x128xbf16, #tpu.memory_space<vmem>>, vector<16x128xbf16>
    %c0_1 = arith.constant 0 : index
    %c0_2 = arith.constant 0 : index
    %1 = vector.load %arg2[%c0_1, %c0_2] : memref<128x256xbf16, #tpu.memory_space<vmem>>, vector<128x256xbf16>
    %cst = arith.constant dense<0.000000e+00> : vector<16x256xf32>
    %2 = tpu.matmul %0, %1, %cst {dimension_numbers = #tpu.dot_dimension_numbers<[1], [0], [0], [1], [0, 0, 1, 1], [], []>} : vector<16x128xbf16>, vector<128x256xbf16>, vector<16x256xf32> -> vector<16x256xf32>
    %c0_3 = arith.constant 0 : index
    %c0_4 = arith.constant 0 : index
    %3 = vector.load %arg3[%c0_3, %c0_4] : memref<1x256xf32, #tpu.memory_space<vmem>>, vector<1x256xf32>
    %4 = vector.broadcast %3 : vector<1x256xf32> to vector<16x256xf32>
    %5 = arith.addf %2, %4 : vector<16x256xf32>
    %cst_5 = arith.constant 0.000000e+00 : f32
    %6 = vector.broadcast %cst_5 : f32 to vector<16x256xf32>
    %7 = arith.maximumf %5, %6 : vector<16x256xf32>
    %c0_6 = arith.constant 0 : index
    %c0_7 = arith.constant 0 : index
    %8 = vector.load %arg9[%c0_6, %c0_7] : memref<16x256xf32, #tpu.memory_space<vmem>>, vector<16x256xf32>
    tpu.vector_store %arg9[%c0_6, %c0_7], %7 {strides = array<i32>} : memref<16x256xf32, #tpu.memory_space<vmem>>, vector<16x256xf32>,
    %c0_8 = arith.constant 0 : index
    %c0_9 = arith.constant 0 : index
    %9 = vector.load %arg9[%c0_8, %c0_9] : memref<16x256xf32, #tpu.memory_space<vmem>>, vector<16x256xf32>
    %10 = arith.truncf %9 : vector<16x256xf32> to vector<16x256xbf16>
    %c0_10 = arith.constant 0 : index
    %c0_11 = arith.constant 0 : index
    %c0_12 = arith.constant 0 : index
    %11 = vector.load %arg4[%c0_10, %c0_11, %c0_12] : memref<7x256x256xbf16, #tpu.memory_space<vmem>>, vector<1x256x256xbf16>
    %12 = vector.shape_cast %11 : vector<1x256x256xbf16> to vector<256x256xbf16>
    %cst_13 = arith.constant dense<0.000000e+00> : vector<16x256xf32>
    %13 = tpu.matmul %10, %12, %cst_13 {dimension_numbers = #tpu.dot_dimension_numbers<[1], [0], [0], [1], [0, 0, 1, 1], [], []>} : vector<16x256xbf16>, vector<256x256xbf16>, vector<16x256xf32> -> vector<16x256xf32>
    %c0_14 = arith.constant 0 : index
    %c0_15 = arith.constant 0 : index
    %c0_16 = arith.constant 0 : index
    %14 = vector.load %arg5[%c0_14, %c0_15, %c0_16] : memref<7x1x256xf32, #tpu.memory_space<vmem>>, vector<1x1x256xf32>
    %15 = vector.shape_cast %14 : vector<1x1x256xf32> to vector<1x256xf32>
    %16 = vector.broadcast %15 : vector<1x256xf32> to vector<16x256xf32>
    %17 = arith.addf %13, %16 : vector<16x256xf32>
    %18 = arith.addf %17, %9 : vector<16x256xf32>
    %cst_17 = arith.constant 0.000000e+00 : f32
    %19 = vector.broadcast %cst_17 : f32 to vector<16x256xf32>
    %20 = arith.maximumf %18, %19 : vector<16x256xf32>
    %c0_18 = arith.constant 0 : index
    %c0_19 = arith.constant 0 : index
    %21 = vector.load %arg9[%c0_18, %c0_19] : memref<16x256xf32, #tpu.memory_space<vmem>>, vector<16x256xf32>
    tpu.vector_store %arg9[%c0_18, %c0_19], %20 {strides = array<i32>} : memref<16x256xf32, #tpu.memory_space<vmem>>, vector<16x256xf32>,
    %c0_20 = arith.constant 0 : index
    %c0_21 = arith.constant 0 : index
    %22 = vector.load %arg9[%c0_20, %c0_21] : memref<16x256xf32, #tpu.memory_space<vmem>>, vector<16x256xf32>
    %23 = arith.truncf %22 : vector<16x256xf32> to vector<16x256xbf16>
    %c1 = arith.constant 1 : index
    %c0_22 = arith.constant 0 : index
    %c0_23 = arith.constant 0 : index
    %24 = vector.load %arg4[%c1, %c0_22, %c0_23] : memref<7x256x256xbf16, #tpu.memory_space<vmem>>, vector<1x256x256xbf16>
    %25 = vector.shape_cast %24 : vector<1x256x256xbf16> to vector<256x256xbf16>
    %cst_24 = arith.constant dense<0.000000e+00> : vector<16x256xf32>
    %26 = tpu.matmul %23, %25, %cst_24 {dimension_numbers = #tpu.dot_dimension_numbers<[1], [0], [0], [1], [0, 0, 1, 1], [], []>} : vector<16x256xbf16>, vector<256x256xbf16>, vector<16x256xf32> -> vector<16x256xf32>
    %c1_25 = arith.constant 1 : index
    %c0_26 = arith.constant 0 : index
    %c0_27 = arith.constant 0 : index
    %27 = vector.load %arg5[%c1_25, %c0_26, %c0_27] : memref<7x1x256xf32, #tpu.memory_space<vmem>>, vector<1x1x256xf32>
    %28 = vector.shape_cast %27 : vector<1x1x256xf32> to vector<1x256xf32>
    %29 = vector.broadcast %28 : vector<1x256xf32> to vector<16x256xf32>
    %30 = arith.addf %26, %29 : vector<16x256xf32>
    %31 = arith.addf %30, %22 : vector<16x256xf32>
    %cst_28 = arith.constant 0.000000e+00 : f32
    %32 = vector.broadcast %cst_28 : f32 to vector<16x256xf32>
    %33 = arith.maximumf %31, %32 : vector<16x256xf32>
    %c0_29 = arith.constant 0 : index
    %c0_30 = arith.constant 0 : index
    %34 = vector.load %arg9[%c0_29, %c0_30] : memref<16x256xf32, #tpu.memory_space<vmem>>, vector<16x256xf32>
    tpu.vector_store %arg9[%c0_29, %c0_30], %33 {strides = array<i32>} : memref<16x256xf32, #tpu.memory_space<vmem>>, vector<16x256xf32>,
    %c0_31 = arith.constant 0 : index
    %c0_32 = arith.constant 0 : index
    %35 = vector.load %arg9[%c0_31, %c0_32] : memref<16x256xf32, #tpu.memory_space<vmem>>, vector<16x256xf32>
    %36 = arith.truncf %35 : vector<16x256xf32> to vector<16x256xbf16>
    %c2 = arith.constant 2 : index
    %c0_33 = arith.constant 0 : index
    %c0_34 = arith.constant 0 : index
    %37 = vector.load %arg4[%c2, %c0_33, %c0_34] : memref<7x256x256xbf16, #tpu.memory_space<vmem>>, vector<1x256x256xbf16>
    %38 = vector.shape_cast %37 : vector<1x256x256xbf16> to vector<256x256xbf16>
    %cst_35 = arith.constant dense<0.000000e+00> : vector<16x256xf32>
    %39 = tpu.matmul %36, %38, %cst_35 {dimension_numbers = #tpu.dot_dimension_numbers<[1], [0], [0], [1], [0, 0, 1, 1], [], []>} : vector<16x256xbf16>, vector<256x256xbf16>, vector<16x256xf32> -> vector<16x256xf32>
    %c2_36 = arith.constant 2 : index
    %c0_37 = arith.constant 0 : index
    %c0_38 = arith.constant 0 : index
    %40 = vector.load %arg5[%c2_36, %c0_37, %c0_38] : memref<7x1x256xf32, #tpu.memory_space<vmem>>, vector<1x1x256xf32>
    %41 = vector.shape_cast %40 : vector<1x1x256xf32> to vector<1x256xf32>
    %42 = vector.broadcast %41 : vector<1x256xf32> to vector<16x256xf32>
    %43 = arith.addf %39, %42 : vector<16x256xf32>
    %44 = arith.addf %43, %35 : vector<16x256xf32>
    %cst_39 = arith.constant 0.000000e+00 : f32
    %45 = vector.broadcast %cst_39 : f32 to vector<16x256xf32>
    %46 = arith.maximumf %44, %45 : vector<16x256xf32>
    %c0_40 = arith.constant 0 : index
    %c0_41 = arith.constant 0 : index
    %47 = vector.load %arg9[%c0_40, %c0_41] : memref<16x256xf32, #tpu.memory_space<vmem>>, vector<16x256xf32>
    tpu.vector_store %arg9[%c0_40, %c0_41], %46 {strides = array<i32>} : memref<16x256xf32, #tpu.memory_space<vmem>>, vector<16x256xf32>,
    %c0_42 = arith.constant 0 : index
    %c0_43 = arith.constant 0 : index
    %48 = vector.load %arg9[%c0_42, %c0_43] : memref<16x256xf32, #tpu.memory_space<vmem>>, vector<16x256xf32>
    %49 = arith.truncf %48 : vector<16x256xf32> to vector<16x256xbf16>
    %c3 = arith.constant 3 : index
    %c0_44 = arith.constant 0 : index
    %c0_45 = arith.constant 0 : index
    %50 = vector.load %arg4[%c3, %c0_44, %c0_45] : memref<7x256x256xbf16, #tpu.memory_space<vmem>>, vector<1x256x256xbf16>
    %51 = vector.shape_cast %50 : vector<1x256x256xbf16> to vector<256x256xbf16>
    %cst_46 = arith.constant dense<0.000000e+00> : vector<16x256xf32>
    %52 = tpu.matmul %49, %51, %cst_46 {dimension_numbers = #tpu.dot_dimension_numbers<[1], [0], [0], [1], [0, 0, 1, 1], [], []>} : vector<16x256xbf16>, vector<256x256xbf16>, vector<16x256xf32> -> vector<16x256xf32>
    %c3_47 = arith.constant 3 : index
    %c0_48 = arith.constant 0 : index
    %c0_49 = arith.constant 0 : index
    %53 = vector.load %arg5[%c3_47, %c0_48, %c0_49] : memref<7x1x256xf32, #tpu.memory_space<vmem>>, vector<1x1x256xf32>
    %54 = vector.shape_cast %53 : vector<1x1x256xf32> to vector<1x256xf32>
    %55 = vector.broadcast %54 : vector<1x256xf32> to vector<16x256xf32>
    %56 = arith.addf %52, %55 : vector<16x256xf32>
    %57 = arith.addf %56, %48 : vector<16x256xf32>
    %cst_50 = arith.constant 0.000000e+00 : f32
    %58 = vector.broadcast %cst_50 : f32 to vector<16x256xf32>
    %59 = arith.maximumf %57, %58 : vector<16x256xf32>
    %c0_51 = arith.constant 0 : index
    %c0_52 = arith.constant 0 : index
    %60 = vector.load %arg9[%c0_51, %c0_52] : memref<16x256xf32, #tpu.memory_space<vmem>>, vector<16x256xf32>
    tpu.vector_store %arg9[%c0_51, %c0_52], %59 {strides = array<i32>} : memref<16x256xf32, #tpu.memory_space<vmem>>, vector<16x256xf32>,
    %c0_53 = arith.constant 0 : index
    %c0_54 = arith.constant 0 : index
    %61 = vector.load %arg9[%c0_53, %c0_54] : memref<16x256xf32, #tpu.memory_space<vmem>>, vector<16x256xf32>
    %62 = arith.truncf %61 : vector<16x256xf32> to vector<16x256xbf16>
    %c4 = arith.constant 4 : index
    %c0_55 = arith.constant 0 : index
    %c0_56 = arith.constant 0 : index
    %63 = vector.load %arg4[%c4, %c0_55, %c0_56] : memref<7x256x256xbf16, #tpu.memory_space<vmem>>, vector<1x256x256xbf16>
    %64 = vector.shape_cast %63 : vector<1x256x256xbf16> to vector<256x256xbf16>
    %cst_57 = arith.constant dense<0.000000e+00> : vector<16x256xf32>
    %65 = tpu.matmul %62, %64, %cst_57 {dimension_numbers = #tpu.dot_dimension_numbers<[1], [0], [0], [1], [0, 0, 1, 1], [], []>} : vector<16x256xbf16>, vector<256x256xbf16>, vector<16x256xf32> -> vector<16x256xf32>
    %c4_58 = arith.constant 4 : index
    %c0_59 = arith.constant 0 : index
    %c0_60 = arith.constant 0 : index
    %66 = vector.load %arg5[%c4_58, %c0_59, %c0_60] : memref<7x1x256xf32, #tpu.memory_space<vmem>>, vector<1x1x256xf32>
    %67 = vector.shape_cast %66 : vector<1x1x256xf32> to vector<1x256xf32>
    %68 = vector.broadcast %67 : vector<1x256xf32> to vector<16x256xf32>
    %69 = arith.addf %65, %68 : vector<16x256xf32>
    %70 = arith.addf %69, %61 : vector<16x256xf32>
    %cst_61 = arith.constant 0.000000e+00 : f32
    %71 = vector.broadcast %cst_61 : f32 to vector<16x256xf32>
    %72 = arith.maximumf %70, %71 : vector<16x256xf32>
    %c0_62 = arith.constant 0 : index
    %c0_63 = arith.constant 0 : index
    %73 = vector.load %arg9[%c0_62, %c0_63] : memref<16x256xf32, #tpu.memory_space<vmem>>, vector<16x256xf32>
    tpu.vector_store %arg9[%c0_62, %c0_63], %72 {strides = array<i32>} : memref<16x256xf32, #tpu.memory_space<vmem>>, vector<16x256xf32>,
    %c0_64 = arith.constant 0 : index
    %c0_65 = arith.constant 0 : index
    %74 = vector.load %arg9[%c0_64, %c0_65] : memref<16x256xf32, #tpu.memory_space<vmem>>, vector<16x256xf32>
    %75 = arith.truncf %74 : vector<16x256xf32> to vector<16x256xbf16>
    %c5 = arith.constant 5 : index
    %c0_66 = arith.constant 0 : index
    %c0_67 = arith.constant 0 : index
    %76 = vector.load %arg4[%c5, %c0_66, %c0_67] : memref<7x256x256xbf16, #tpu.memory_space<vmem>>, vector<1x256x256xbf16>
    %77 = vector.shape_cast %76 : vector<1x256x256xbf16> to vector<256x256xbf16>
    %cst_68 = arith.constant dense<0.000000e+00> : vector<16x256xf32>
    %78 = tpu.matmul %75, %77, %cst_68 {dimension_numbers = #tpu.dot_dimension_numbers<[1], [0], [0], [1], [0, 0, 1, 1], [], []>} : vector<16x256xbf16>, vector<256x256xbf16>, vector<16x256xf32> -> vector<16x256xf32>
    %c5_69 = arith.constant 5 : index
    %c0_70 = arith.constant 0 : index
    %c0_71 = arith.constant 0 : index
    %79 = vector.load %arg5[%c5_69, %c0_70, %c0_71] : memref<7x1x256xf32, #tpu.memory_space<vmem>>, vector<1x1x256xf32>
    %80 = vector.shape_cast %79 : vector<1x1x256xf32> to vector<1x256xf32>
    %81 = vector.broadcast %80 : vector<1x256xf32> to vector<16x256xf32>
    %82 = arith.addf %78, %81 : vector<16x256xf32>
    %83 = arith.addf %82, %74 : vector<16x256xf32>
    %cst_72 = arith.constant 0.000000e+00 : f32
    %84 = vector.broadcast %cst_72 : f32 to vector<16x256xf32>
    %85 = arith.maximumf %83, %84 : vector<16x256xf32>
    %c0_73 = arith.constant 0 : index
    %c0_74 = arith.constant 0 : index
    %86 = vector.load %arg9[%c0_73, %c0_74] : memref<16x256xf32, #tpu.memory_space<vmem>>, vector<16x256xf32>
    tpu.vector_store %arg9[%c0_73, %c0_74], %85 {strides = array<i32>} : memref<16x256xf32, #tpu.memory_space<vmem>>, vector<16x256xf32>,
    %c0_75 = arith.constant 0 : index
    %c0_76 = arith.constant 0 : index
    %87 = vector.load %arg9[%c0_75, %c0_76] : memref<16x256xf32, #tpu.memory_space<vmem>>, vector<16x256xf32>
    %88 = arith.truncf %87 : vector<16x256xf32> to vector<16x256xbf16>
    %c6 = arith.constant 6 : index
    %c0_77 = arith.constant 0 : index
    %c0_78 = arith.constant 0 : index
    %89 = vector.load %arg4[%c6, %c0_77, %c0_78] : memref<7x256x256xbf16, #tpu.memory_space<vmem>>, vector<1x256x256xbf16>
    %90 = vector.shape_cast %89 : vector<1x256x256xbf16> to vector<256x256xbf16>
    %cst_79 = arith.constant dense<0.000000e+00> : vector<16x256xf32>
    %91 = tpu.matmul %88, %90, %cst_79 {dimension_numbers = #tpu.dot_dimension_numbers<[1], [0], [0], [1], [0, 0, 1, 1], [], []>} : vector<16x256xbf16>, vector<256x256xbf16>, vector<16x256xf32> -> vector<16x256xf32>
    %c6_80 = arith.constant 6 : index
    %c0_81 = arith.constant 0 : index
    %c0_82 = arith.constant 0 : index
    %92 = vector.load %arg5[%c6_80, %c0_81, %c0_82] : memref<7x1x256xf32, #tpu.memory_space<vmem>>, vector<1x1x256xf32>
    %93 = vector.shape_cast %92 : vector<1x1x256xf32> to vector<1x256xf32>
    %94 = vector.broadcast %93 : vector<1x256xf32> to vector<16x256xf32>
    %95 = arith.addf %91, %94 : vector<16x256xf32>
    %96 = arith.addf %95, %87 : vector<16x256xf32>
    %cst_83 = arith.constant 0.000000e+00 : f32
    %97 = vector.broadcast %cst_83 : f32 to vector<16x256xf32>
    %98 = arith.maximumf %96, %97 : vector<16x256xf32>
    %c0_84 = arith.constant 0 : index
    %c0_85 = arith.constant 0 : index
    %99 = vector.load %arg9[%c0_84, %c0_85] : memref<16x256xf32, #tpu.memory_space<vmem>>, vector<16x256xf32>
    tpu.vector_store %arg9[%c0_84, %c0_85], %98 {strides = array<i32>} : memref<16x256xf32, #tpu.memory_space<vmem>>, vector<16x256xf32>,
    %c0_86 = arith.constant 0 : index
    %c0_87 = arith.constant 0 : index
    %100 = vector.load %arg9[%c0_86, %c0_87] : memref<16x256xf32, #tpu.memory_space<vmem>>, vector<16x256xf32>
    %101 = arith.truncf %100 : vector<16x256xf32> to vector<16x256xbf16>
    %c0_88 = arith.constant 0 : index
    %c0_89 = arith.constant 0 : index
    %102 = vector.load %arg6[%c0_88, %c0_89] : memref<256x128xbf16, #tpu.memory_space<vmem>>, vector<256x128xbf16>
    %cst_90 = arith.constant dense<0.000000e+00> : vector<16x128xf32>
    %103 = tpu.matmul %101, %102, %cst_90 {dimension_numbers = #tpu.dot_dimension_numbers<[1], [0], [0], [1], [0, 0, 1, 1], [], []>} : vector<16x256xbf16>, vector<256x128xbf16>, vector<16x128xf32> -> vector<16x128xf32>
    %c0_91 = arith.constant 0 : index
    %c0_92 = arith.constant 0 : index
    %104 = vector.load %arg7[%c0_91, %c0_92] : memref<1x128xf32, #tpu.memory_space<vmem>>, vector<1x128xf32>
    %105 = vector.broadcast %104 : vector<1x128xf32> to vector<16x128xf32>
    %106 = arith.addf %103, %105 : vector<16x128xf32>
    %cst_93 = arith.constant 0.000000e+00 : f32
    %107 = vector.broadcast %cst_93 : f32 to vector<16x128xf32>
    %108 = arith.maximumf %106, %107 : vector<16x128xf32>
    %109 = arith.truncf %108 : vector<16x128xf32> to vector<16x128xbf16>
    %c0_94 = arith.constant 0 : index
    %c0_95 = arith.constant 0 : index
    %110 = vector.load %arg8[%c0_94, %c0_95] : memref<16x128xbf16, #tpu.memory_space<vmem>>, vector<16x128xbf16>
    tpu.vector_store %arg8[%c0_94, %c0_95], %109 {strides = array<i32>} : memref<16x128xbf16, #tpu.memory_space<vmem>>, vector<16x128xbf16>,
    return
  }
  func.func @transform_0(%arg0: i32) -> (i32, i32) {
    %c0_i32 = arith.constant 0 : i32
    %c0_i32_0 = arith.constant 0 : i32
    return %arg0, %c0_i32 : i32, i32
  }
  func.func @transform_1(%arg0: i32) -> (i32, i32) {
    %c0_i32 = arith.constant 0 : i32
    %c0_i32_0 = arith.constant 0 : i32
    %c0_i32_1 = arith.constant 0 : i32
    return %c0_i32, %c0_i32_0 : i32, i32
  }
  func.func @transform_2(%arg0: i32) -> (i32, i32) {
    %c0_i32 = arith.constant 0 : i32
    %c0_i32_0 = arith.constant 0 : i32
    %c0_i32_1 = arith.constant 0 : i32
    return %c0_i32, %c0_i32_0 : i32, i32
  }
  func.func @transform_3(%arg0: i32) -> (i32, i32, i32) {
    %c0_i32 = arith.constant 0 : i32
    %c0_i32_0 = arith.constant 0 : i32
    %c0_i32_1 = arith.constant 0 : i32
    %c0_i32_2 = arith.constant 0 : i32
    return %c0_i32, %c0_i32_0, %c0_i32_1 : i32, i32, i32
  }
  func.func @transform_4(%arg0: i32) -> (i32, i32, i32) {
    %c0_i32 = arith.constant 0 : i32
    %c0_i32_0 = arith.constant 0 : i32
    %c0_i32_1 = arith.constant 0 : i32
    %c0_i32_2 = arith.constant 0 : i32
    return %c0_i32, %c0_i32_0, %c0_i32_1 : i32, i32, i32
  }
  func.func @transform_5(%arg0: i32) -> (i32, i32) {
    %c0_i32 = arith.constant 0 : i32
    %c0_i32_0 = arith.constant 0 : i32
    %c0_i32_1 = arith.constant 0 : i32
    return %c0_i32, %c0_i32_0 : i32, i32
  }
  func.func @transform_6(%arg0: i32) -> (i32, i32) {
    %c0_i32 = arith.constant 0 : i32
    %c0_i32_0 = arith.constant 0 : i32
    %c0_i32_1 = arith.constant 0 : i32
    return %c0_i32, %c0_i32_0 : i32, i32
  }
  func.func @transform_7(%arg0: i32) -> (i32, i32) {
    %c0_i32 = arith.constant 0 : i32
    %c0_i32_0 = arith.constant 0 : i32
    return %arg0, %c0_i32 : i32, i32
  }
}

</mosaic_0001>

<bundles_post_ra>
// kernel: tpu_custom_call.1
= control target key start
LH: loop header
LB: loop body
LE: loop exit
PB: predicated region body
PF: predicated region fallthrough
CT: control target
= control target key end

     0   :  { %12 = vsyncpa [#allocation4], 0  ;;  %s4111_s0 = inlined_call_operand.hbm [shape: bf16[16,128], index: 0, kind: input, shape index: {}]   ;;  %s4112_s1 = inlined_call_operand.hbm [shape: bf16[128,256], index: 1, kind: input, shape index: {}]   ;;  %s4113_s2 = inlined_call_operand.hbm [shape: f32[1,256], index: 2, kind: input, shape index: {}]   ;;  %s4114_s3 = inlined_call_operand.hbm [shape: bf16[7,256,256], index: 3, kind: input, shape index: {}]   ;;  %s4115_s4 = inlined_call_operand.hbm [shape: f32[7,1,256], index: 4, kind: input, shape index: {}]   ;;  %s4116_s5 = inlined_call_operand.hbm [shape: bf16[256,128], index: 5, kind: input, shape index: {}]   ;;  %s4117_s6 = inlined_call_operand.vmem [shape: f32[1,128], index: 6, kind: input, shape index: {}]   ;;  %s4118_s7 = inlined_call_operand.hbm [shape: bf16[16,128], index: 7, kind: output, shape index: {}]  }
   0x1   :  { %13 = vsyncpa [#allocation7], 0 }
   0x2   :  { %14 = vsyncpa [#allocation10], 0 }
   0x3   :  { %15 = vsyncpa [#allocation13], 0  ;;  %s34_s26 = sshll.u32 %s4112_s1, 4  ;;  %s35_s26 = int_to_ptr.hbm [resolvable:$true] %s34_s26 }
   0x4   :  { %16 = vsyncpa [#allocation5], 0  ;;  %s3857_s27 = smov [#allocation6]   ;;  %s58_s8 = sshll.u32 %s4114_s3, 4  ;;  %s59_s8 = int_to_ptr.hbm [resolvable:$true] %s58_s8 }
   0x5   :  { %s36_s28 = sshll.u32 %s3857_s27, 4  ;;  %s3858_s9 = smov 128   ;;  %s37_s28 = int_to_ptr.vmem [resolvable:$true] %s36_s28 }
   0x6   :  { %s3859_s10 = smov 8   ;;  %s3860_s11 = smov [#allocation9]  }
   0x7   :  { %42 = dma.hbm_to_vmem [thread:$0]  %s35_s26, 2048, %s37_s28, [#allocation7], %s3858_s9, %s3858_s9, %s3859_s10  }
   0x8   :  { %s60_s12 = sshll.u32 %s3860_s11, 4  ;;  %s21_s15 = sshll.u32 %s4111_s0, 4  ;;  %s61_s12 = int_to_ptr.vmem [resolvable:$true] %s60_s12  ;;  %s22_s15 = int_to_ptr.hbm [resolvable:$true] %s21_s15 }
   0x9   :  { %66 = dma.hbm_to_vmem [thread:$0]  %s59_s8, 28672, %s61_s12, [#allocation10], %s3858_s9, %s3858_s9, %s3859_s10  }
   0xa   :  { %s3861_s1 = smov [#allocation3]   ;;  %s48_s3 = sshll.u32 %s4113_s2, 4  ;;  %s49_s3 = int_to_ptr.hbm [resolvable:$true] %s48_s3 }
   0xb   :  { %s23_s16 = sshll.u32 %s3861_s1, 4  ;;  %s3862_s19 = smov 64   ;;  %s24_s16 = int_to_ptr.vmem [resolvable:$true] %s23_s16 }
   0xc   :  { %s3863_s20 = smov 4   ;;  %s3864_s21 = smov [#allocation8]  }
   0xd   :  { %29 = dma.hbm_to_vmem [thread:$0]  %s22_s15, 128, %s24_s16, [#allocation4], %s3862_s19, %s3862_s19, %s3863_s20  }
   0xe   :  { %s50_s22 = sshll.u32 %s3864_s21, 4  ;;  %s71_s24 = sshll.u32 %s4115_s4, 4  ;;  %s51_s22 = int_to_ptr.vmem [resolvable:$true] %s50_s22  ;;  %s72_s24 = int_to_ptr.hbm [resolvable:$true] %s71_s24 }
   0xf   :  { %53 = dma.hbm_to_vmem [thread:$0]  %s49_s3, 32, %s51_s22, [#allocation7]  }
  0x10   :  { %s3865_s25 = smov [#allocation11]   ;;  %s84_s28 = sshll.u32 %s4116_s5, 4  ;;  %s85_s28 = int_to_ptr.hbm [resolvable:$true] %s84_s28 }
  0x11   :  { %s73_s26 = sshll.u32 %s3865_s25, 4  ;;  %s3866_s29 = smov 32   ;;  %s74_s26 = int_to_ptr.vmem [resolvable:$true] %s73_s26 }
  0x12   :  { %s3867_s30 = smov 2   ;;  %s3868_s8 = smov [#allocation12]  }
  0x13   :  { %79 = dma.hbm_to_vmem [thread:$0]  %s72_s24, 224, %s74_s26, [#allocation10], %s3866_s29, %s3866_s29, %s3867_s30  }
  0x14   :  { %s86_s9 = sshll.u32 %s3868_s8, 4  ;;  %s87_s9 = int_to_ptr.vmem [resolvable:$true] %s86_s9 }
  0x15   :  { %92 = dma.hbm_to_vmem [thread:$0]  %s85_s28, 2048, %s87_s9, [#allocation13], %s3862_s19, %s3862_s19, %s3863_s20  }
  0x16   :  { %3847 = dma.done.wait [#allocation4], 128  }
  0x17   :  { %3848 = vsyncadd [#allocation4], 4294967168 }
  0x18   :  { %3849 = dma.done.wait [#allocation7], 2080  }
  0x19   :  { %3850 = vsyncadd [#allocation7], 4294965216 }
  0x1a   :  { %3851 = dma.done.wait [#allocation10], 28896  }
  0x1b   :  { %3852 = vsyncadd [#allocation10], 4294938400 }
  0x1c   :  { %3853 = dma.done.wait [#allocation13], 2048  }
  0x1d   :  { %3854 = vsyncadd [#allocation13], 4294965248  ;;  %v2437_v0 = vld [vmem:[#allocation6 + $0x70] sm:$0xf]  ;;  %v3419_v1 = vld [vmem:[#allocation6 + $0x74] sm:$0xf0] }
  0x1e   :  { %v3418_v2 = vld [vmem:[#allocation6 + $0x74] sm:$0xf]  ;;  %v2438_v3 = vor.u32 %v3419_v1, %v2437_v0  ;;  %v2439_v4 = vld [vmem:[#allocation6 + $0x78] sm:$0xf0]  ;;  %v2429_v5 = vld [vmem:[#allocation6 + $0x60] sm:$0xf] }
  0x1f   :  { %v3417_v6 = vld [vmem:[#allocation6 + $0x64] sm:$0xf0]  ;;  %v2442_v7 = vor.u32 %v3418_v2, %v2439_v4  ;;  %v3416_v8 = vld [vmem:[#allocation6 + $0x64] sm:$0xf]  ;;  %v2431_v9 = vld [vmem:[#allocation6 + $0x68] sm:$0xf0] }
  0x20   :  { %229 = vmatpush.bf16.msra.mxu0 %v2438_v3  ;;  %v2430_v10 = vor.u32 %v3417_v6, %v2429_v5  ;;  %v2434_v11 = vor.u32 %v3416_v8, %v2431_v9  ;;  %v2421_v12 = vld [vmem:[#allocation6 + $0x50] sm:$0xf]  ;;  %v3415_v13 = vld [vmem:[#allocation6 + $0x54] sm:$0xf0]  ;;  %v3414_v14 = vld [vmem:[#allocation6 + $0x54] sm:$0xf] }
  0x21   :  { %243 = vmatpush.bf16.msra.mxu1 %v2442_v7  ;;  %v2423_v15 = vld [vmem:[#allocation6 + $0x58] sm:$0xf0]  ;;  %v2422_v16 = vor.u32 %v3415_v13, %v2421_v12  ;;  %v2413_v18 = vld [vmem:[#allocation6 + $0x40] sm:$0xf]  ;;  %v3413_v19 = vld [vmem:[#allocation6 + $0x44] sm:$0xf0] }
  0x22   :  { %v2426_v17 = vor.u32 %v3414_v14, %v2423_v15  ;;  %v3412_v20 = vld [vmem:[#allocation6 + $0x44] sm:$0xf]  ;;  %v2415_v21 = vld [vmem:[#allocation6 + $0x48] sm:$0xf0]  ;;  %v2414_v22 = vor.u32 %v3413_v19, %v2413_v18  ;;  %v2501_v23 = vld [vmem:[#allocation9 + $0x70] sm:$0xf] }
  0x23   :  { %v3435_v24 = vld [vmem:[#allocation9 + $0x74] sm:$0xf0]  ;;  %v2565_v25 = vld [vmem:[#allocation9 + $0xf0] sm:$0xf]  ;;  %v2418_v26 = vor.u32 %v3412_v20, %v2415_v21  ;;  %v2493_v34 = vld [vmem:[#allocation9 + $0x60] sm:$0xf] }
  0x24   :  { %230 = vmatpush.bf16.msra.mxu0 %v2430_v10  ;;  %v2405_v27 = vld [vmem:[#allocation6 + $0x30] sm:$0xf]  ;;  %v3411_v28 = vld [vmem:[#allocation6 + $0x34] sm:$0xf0]  ;;  %v2502_v29 = vor.u32 %v3435_v24, %v2501_v23  ;;  %v3410_v31 = vld [vmem:[#allocation6 + $0x34] sm:$0xf] }
  0x25   :  { %244 = vmatpush.bf16.msra.mxu1 %v2434_v11  ;;  %v3451_v30 = vld [vmem:[#allocation9 + $0xf4] sm:$0xf0]  ;;  %v3433_v35 = vld [vmem:[#allocation9 + $0x64] sm:$0xf0]  ;;  %v2557_v36 = vld [vmem:[#allocation9 + $0xe0] sm:$0xf]  ;;  %v2406_v38 = vor.u32 %v3411_v28, %v2405_v27 }
  0x26   :  { %v2407_v32 = vld [vmem:[#allocation6 + $0x38] sm:$0xf0]  ;;  %v2566_v33 = vor.u32 %v3451_v30, %v2565_v25  ;;  %469 = vmatpush.bf16.msra.mxu2 %v2502_v29  ;;  %v3449_v37 = vld [vmem:[#allocation9 + $0xe4] sm:$0xf0]  ;;  %v2397_v39 = vld [vmem:[#allocation6 + $0x20] sm:$0xf]  ;;  %v2494_v41 = vor.u32 %v3433_v35, %v2493_v34 }
  0x27   :  { %v3409_v40 = vld [vmem:[#allocation6 + $0x24] sm:$0xf0]  ;;  %v2558_v42 = vor.u32 %v3449_v37, %v2557_v36  ;;  %v2410_v43 = vor.u32 %v3410_v31, %v2407_v32  ;;  %v3408_v44 = vld [vmem:[#allocation6 + $0x24] sm:$0xf]  ;;  %v2485_v45 = vld [vmem:[#allocation9 + $0x50] sm:$0xf] }
  0x28   :  { %231 = vmatpush.bf16.msra.mxu0 %v2422_v16  ;;  %483 = vmatpush.bf16.msra.mxu3 %v2566_v33  ;;  %v3431_v46 = vld [vmem:[#allocation9 + $0x54] sm:$0xf0]  ;;  %v2399_v47 = vld [vmem:[#allocation6 + $0x28] sm:$0xf0]  ;;  %v2549_v48 = vld [vmem:[#allocation9 + $0xd0] sm:$0xf]  ;;  %v2398_v51 = vor.u32 %v3409_v40, %v2397_v39 }
  0x29   :  { %245 = vmatpush.bf16.msra.mxu1 %v2426_v17  ;;  %v3447_v49 = vld [vmem:[#allocation9 + $0xd4] sm:$0xf0]  ;;  %v2486_v50 = vor.u32 %v3431_v46, %v2485_v45  ;;  %v2389_v52 = vld [vmem:[#allocation6 + $0x10] sm:$0xf]  ;;  %v2477_v54 = vld [vmem:[#allocation9 + $0x40] sm:$0xf]  ;;  %v2402_v56 = vor.u32 %v3408_v44, %v2399_v47 }
  0x2a   :  { %470 = vmatpush.bf16.msra.mxu2 %v2494_v41  ;;  %v2550_v53 = vor.u32 %v3447_v49, %v2549_v48  ;;  %v3429_v55 = vld [vmem:[#allocation9 + $0x44] sm:$0xf0]  ;;  %v3407_v57 = vld [vmem:[#allocation6 + $0x14] sm:$0xf0]  ;;  %v2541_v58 = vld [vmem:[#allocation9 + $0xc0] sm:$0xf] }
  0x2b   :  { %v3445_v59 = vld [vmem:[#allocation9 + $0xc4] sm:$0xf0]  ;;  %v3406_v60 = vld [vmem:[#allocation6 + $0x14] sm:$0xf]  ;;  %v2391_v61 = vld [vmem:[#allocation6 + $0x18] sm:$0xf0]  ;;  %v2478_v62 = vor.u32 %v3429_v55, %v2477_v54  ;;  %v2390_v63 = vor.u32 %v3407_v57, %v2389_v52 }
  0x2c   :  { %232 = vmatpush.bf16.msra.mxu0 %v2414_v22  ;;  %484 = vmatpush.bf16.msra.mxu3 %v2558_v42  ;;  %v2542_v0 = vor.u32 %v3445_v59, %v2541_v58  ;;  %v2394_v1 = vor.u32 %v3406_v60, %v2391_v61  ;;  %v2381_v2 = vld [vmem:[#allocation6] sm:$0xf]  ;;  %v3405_v3 = vld [vmem:[#allocation6 + $0x4] sm:$0xf0]  ;;  %v3404_v4 = vld [vmem:[#allocation6 + $0x4] sm:$0xf] }
  0x2d   :  { %246 = vmatpush.bf16.msra.mxu1 %v2418_v26  ;;  %v2383_v5 = vld [vmem:[#allocation6 + $0x8] sm:$0xf0]  ;;  %v3434_v6 = vld [vmem:[#allocation9 + $0x74] sm:$0xf]  ;;  %v2503_v7 = vld [vmem:[#allocation9 + $0x78] sm:$0xf0]  ;;  %v2382_v10 = vor.u32 %v3405_v3, %v2381_v2 }
  0x2e   :  { %471 = vmatpush.bf16.msra.mxu2 %v2486_v50  ;;  %v3450_v8 = vld [vmem:[#allocation9 + $0xf4] sm:$0xf]  ;;  %v2567_v9 = vld [vmem:[#allocation9 + $0xf8] sm:$0xf0]  ;;  %v2386_v11 = vor.u32 %v3404_v4, %v2383_v5  ;;  %v2506_v12 = vor.u32 %v3434_v6, %v2503_v7  ;;  %v3432_v14 = vld [vmem:[#allocation9 + $0x64] sm:$0xf] }
  0x2f   :  { %v2570_v13 = vor.u32 %v3450_v8, %v2567_v9  ;;  %v2495_v15 = vld [vmem:[#allocation9 + $0x68] sm:$0xf0]  ;;  %v3403_v16 = vld [vmem:[#allocation3] sm:$0xff]  ;;  %v3448_v17 = vld [vmem:[#allocation9 + $0xe4] sm:$0xf]  ;;  %s3869_s10 = smov [#allocation14]  }
  0x30   :  { %233 = vmatpush.bf16.msra.mxu0 %v2406_v38  ;;  %485 = vmatpush.bf16.msra.mxu3 %v2550_v53  ;;  %v2559_v18 = vld [vmem:[#allocation9 + $0xe8] sm:$0xf0]  ;;  %v2498_v19 = vor.u32 %v3432_v14, %v2495_v15  ;;  %v3430_v21 = vld [vmem:[#allocation9 + $0x54] sm:$0xf]  ;;  %v2487_v22 = vld [vmem:[#allocation9 + $0x58] sm:$0xf0] }
  0x31   :  { %247 = vmatpush.bf16.msra.mxu1 %v2410_v43  ;;  %v2562_v20 = vor.u32 %v3448_v17, %v2559_v18  ;;  %v3446_v23 = vld [vmem:[#allocation9 + $0xd4] sm:$0xf]  ;;  %v2551_v24 = vld [vmem:[#allocation9 + $0xd8] sm:$0xf0]  ;;  %v2490_v25 = vor.u32 %v3430_v21, %v2487_v22  ;;  %v3428_v27 = vld [vmem:[#allocation9 + $0x44] sm:$0xf] }
  0x32   :  { %472 = vmatpush.bf16.msra.mxu2 %v2478_v62  ;;  %v2554_v26 = vor.u32 %v3446_v23, %v2551_v24  ;;  %v2479_v28 = vld [vmem:[#allocation9 + $0x48] sm:$0xf0]  ;;  %v3444_v29 = vld [vmem:[#allocation9 + $0xc4] sm:$0xf]  ;;  %v2469_v33 = vld [vmem:[#allocation9 + $0x30] sm:$0xf] }
  0x33   :  { %v2543_v30 = vld [vmem:[#allocation9 + $0xc8] sm:$0xf0]  ;;  %v2482_v31 = vor.u32 %v3428_v27, %v2479_v28  ;;  %v3427_v34 = vld [vmem:[#allocation9 + $0x34] sm:$0xf0]  ;;  %v2533_v35 = vld [vmem:[#allocation9 + $0xb0] sm:$0xf] }
  0x34   :  { %234 = vmatpush.bf16.msra.mxu0 %v2398_v51  ;;  %486 = vmatpush.bf16.msra.mxu3 %v2542_v0  ;;  %v2546_v32 = vor.u32 %v3444_v29, %v2543_v30  ;;  %v2470_v36 = vor.u32 %v3427_v34, %v2469_v33  ;;  %v3443_v37 = vld [vmem:[#allocation9 + $0xb4] sm:$0xf0]  ;;  %v3426_v38 = vld [vmem:[#allocation9 + $0x34] sm:$0xf]  ;;  %v2471_v39 = vld [vmem:[#allocation9 + $0x38] sm:$0xf0] }
  0x35   :  { %248 = vmatpush.bf16.msra.mxu1 %v2402_v56  ;;  %v2534_v40 = vor.u32 %v3443_v37, %v2533_v35  ;;  %v2474_v41 = vor.u32 %v3426_v38, %v2471_v39  ;;  %v3442_v42 = vld [vmem:[#allocation9 + $0xb4] sm:$0xf]  ;;  %v2535_v43 = vld [vmem:[#allocation9 + $0xb8] sm:$0xf0]  ;;  %v2461_v45 = vld [vmem:[#allocation9 + $0x20] sm:$0xf] }
  0x36   :  { %473 = vmatpush.bf16.msra.mxu2 %v2470_v36  ;;  %v2538_v44 = vor.u32 %v3442_v42, %v2535_v43  ;;  %v3425_v46 = vld [vmem:[#allocation9 + $0x24] sm:$0xf0]  ;;  %v2525_v48 = vld [vmem:[#allocation9 + $0xa0] sm:$0xf]  ;;  %v3424_v50 = vld [vmem:[#allocation9 + $0x24] sm:$0xf] }
  0x37   :  { %v2462_v47 = vor.u32 %v3425_v46, %v2461_v45  ;;  %v3441_v49 = vld [vmem:[#allocation9 + $0xa4] sm:$0xf0]  ;;  %v2463_v52 = vld [vmem:[#allocation9 + $0x28] sm:$0xf0]  ;;  %v3440_v53 = vld [vmem:[#allocation9 + $0xa4] sm:$0xf] }
  0x38   :  { %235 = vmatpush.bf16.msra.mxu0 %v2390_v63  ;;  %487 = vmatpush.bf16.msra.mxu3 %v2534_v40  ;;  %v2526_v51 = vor.u32 %v3441_v49, %v2525_v48  ;;  %v2527_v54 = vld [vmem:[#allocation9 + $0xa8] sm:$0xf0]  ;;  %v2466_v55 = vor.u32 %v3424_v50, %v2463_v52  ;;  %v2453_v57 = vld [vmem:[#allocation9 + $0x10] sm:$0xf]  ;;  %v3423_v58 = vld [vmem:[#allocation9 + $0x14] sm:$0xf0] }
  0x39   :  { %249 = vmatpush.bf16.msra.mxu1 %v2394_v1  ;;  %v2530_v56 = vor.u32 %v3440_v53, %v2527_v54  ;;  %v2517_v59 = vld [vmem:[#allocation9 + $0x90] sm:$0xf]  ;;  %v2454_v60 = vor.u32 %v3423_v58, %v2453_v57  ;;  %v3439_v61 = vld [vmem:[#allocation9 + $0x94] sm:$0xf0]  ;;  %v3422_v62 = vld [vmem:[#allocation9 + $0x14] sm:$0xf] }
  0x3a   :  { %474 = vmatpush.bf16.msra.mxu2 %v2462_v47  ;;  %v2455_v63 = vld [vmem:[#allocation9 + $0x18] sm:$0xf0]  ;;  %v2518_v0 = vor.u32 %v3439_v61, %v2517_v59  ;;  %v3438_v2 = vld [vmem:[#allocation9 + $0x94] sm:$0xf]  ;;  %v2445_v5 = vld [vmem:[#allocation9] sm:$0xf] }
  0x3b   :  { %v2458_v1 = vor.u32 %v3422_v62, %v2455_v63  ;;  %v2519_v3 = vld [vmem:[#allocation9 + $0x98] sm:$0xf0]  ;;  %v3421_v6 = vld [vmem:[#allocation9 + $0x4] sm:$0xf0]  ;;  %v2509_v7 = vld [vmem:[#allocation9 + $0x80] sm:$0xf] }
  0x3c   :  { %236 = vmatpush.bf16.msra.mxu0 %v2382_v10  ;;  %488 = vmatpush.bf16.msra.mxu3 %v2526_v51  ;;  %v2522_v4 = vor.u32 %v3438_v2, %v2519_v3  ;;  %v2446_v8 = vor.u32 %v3421_v6, %v2445_v5  ;;  %v3437_v9 = vld [vmem:[#allocation9 + $0x84] sm:$0xf0]  ;;  %v3420_v10 = vld [vmem:[#allocation9 + $0x4] sm:$0xf]  ;;  %v2511_v15 = vld [vmem:[#allocation9 + $0x88] sm:$0xf0] }
  0x3d   :  { %250 = vmatpush.bf16.msra.mxu1 %v2386_v11  ;;  %v2447_v11 = vld [vmem:[#allocation9 + $0x8] sm:$0xf0]  ;;  %v3436_v14 = vld [vmem:[#allocation9 + $0x84] sm:$0xf]  ;;  %v2693_v17 = vld [vmem:[#allocation9 + $0x1f0] sm:$0xf] }
  0x3e   :  { %475 = vmatpush.bf16.msra.mxu2 %v2454_v60  ;;  %v3483_v18 = vld [vmem:[#allocation9 + $0x1f4] sm:$0xf0]  ;;  %v2695_v21 = vld [vmem:[#allocation9 + $0x1f8] sm:$0xf0]  ;;  %v2685_v22 = vld [vmem:[#allocation9 + $0x1e0] sm:$0xf] }
  0x3f   :  { %237 = vmatmul.bf16.vlgmr.msra.gmra.mxu0 %v3403_v16  ;;  %v3481_v23 = vld [vmem:[#allocation9 + $0x1e4] sm:$0xf0]  ;;  %v2629_v27 = vld [vmem:[#allocation9 + $0x170] sm:$0xf]  ;;  %v3467_v29 = vld [vmem:[#allocation9 + $0x174] sm:$0xf0] }
  0x40   :  { %497 = vmatpush.bf16.msrb.mxu0 %v2506_v12  ;;  %251 = vmatmul.bf16.vlgmr.msra.gmra.mxu1 %v3403_v16  ;;  %v2510_v12 = vor.u32 %v3437_v9, %v2509_v7  ;;  %v2514_v16 = vor.u32 %v3436_v14, %v2511_v15  ;;  %v2686_v28 = vor.u32 %v3481_v23, %v2685_v22  ;;  %v3466_v30 = vld [vmem:[#allocation9 + $0x174] sm:$0xf]  ;;  %v2677_v35 = vld [vmem:[#allocation9 + $0x1d0] sm:$0xf]  ;;  %v3479_v36 = vld [vmem:[#allocation9 + $0x1d4] sm:$0xf0] }
  0x41   :  { %511 = vmatpush.bf16.msrb.mxu1 %v2570_v13  ;;  %489 = vmatpush.bf16.msra.mxu3 %v2518_v0  ;;  %v2450_v13 = vor.u32 %v3420_v10, %v2447_v11  ;;  %v2630_v33 = vor.u32 %v3467_v29, %v2629_v27  ;;  %v3478_v37 = vld [vmem:[#allocation9 + $0x1d4] sm:$0xf]  ;;  %v2679_v38 = vld [vmem:[#allocation9 + $0x1d8] sm:$0xf0]  ;;  %v2621_v39 = vld [vmem:[#allocation9 + $0x160] sm:$0xf] }
  0x42   :  { %476 = vmatpush.bf16.msra.mxu2 %v2446_v8  ;;  %v3465_v40 = vld [vmem:[#allocation9 + $0x164] sm:$0xf0]  ;;  %v3464_v42 = vld [vmem:[#allocation9 + $0x164] sm:$0xf]  ;;  %v2623_v43 = vld [vmem:[#allocation9 + $0x168] sm:$0xf0]  ;;  %v2682_v46 = vor.u32 %v3478_v37, %v2679_v38 }
  0x43   :  { %v2626_v45 = vor.u32 %v3464_v42, %v2623_v43  ;;  %v137_v47 = vld [vmem:[#allocation8] sm:$0x3]  ;;  %v2669_v0 = vld [vmem:[#allocation9 + $0x1c0] sm:$0xf]  ;;  %v3476_v2 = vld [vmem:[#allocation9 + $0x1c4] sm:$0xf] }
  0x44   :  { %498 = vmatpush.bf16.msrb.mxu0 %v2498_v19  ;;  %v3482_v19 = vld [vmem:[#allocation9 + $0x1f4] sm:$0xf]  ;;  %v139_v50 = vperm.slane %v137_v47, 0  ;;  %v140_v51 = vperm.slane %v137_v47, 1  ;;  %v2613_v6 = vld [vmem:[#allocation9 + $0x150] sm:$0xf] }
  0x45   :  { %512 = vmatpush.bf16.msrb.mxu1 %v2562_v20  ;;  %490 = vmatpush.bf16.msra.mxu3 %v2510_v12  ;;  %v2694_v20 = vor.u32 %v3483_v18, %v2693_v17  ;;  %v2698_v24 = vor.u32 %v3482_v19, %v2695_v21  ;;  %v3463_v7 = vld [vmem:[#allocation9 + $0x154] sm:$0xf0]  ;;  %v3462_v8 = vld [vmem:[#allocation9 + $0x154] sm:$0xf]  ;;  %v2615_v10 = vld [vmem:[#allocation9 + $0x158] sm:$0xf0] }
  0x46   :  { %743 = vmatpush.bf16.msrb.mxu2 %v2630_v33  ;;  %v2614_v9 = vor.u32 %v3463_v7, %v2613_v6  ;;  %v2618_v11 = vor.u32 %v3462_v8, %v2615_v10  ;;  %v2661_v12 = vld [vmem:[#allocation9 + $0x1b0] sm:$0xf]  ;;  %v3474_v14 = vld [vmem:[#allocation9 + $0x1b4] sm:$0xf]  ;;  %v2605_v18 = vld [vmem:[#allocation9 + $0x140] sm:$0xf] }
  0x47   :  { %v3461_v19 = vld [vmem:[#allocation9 + $0x144] sm:$0xf0]  ;;  %v2607_v22 = vld [vmem:[#allocation9 + $0x148] sm:$0xf0]  ;;  %v3472_v27 = vld [vmem:[#allocation9 + $0x1a4] sm:$0xf] }
  0x48   :  { %499 = vmatpush.bf16.msrb.mxu0 %v2490_v25  ;;  %v3480_v25 = vld [vmem:[#allocation9 + $0x1e4] sm:$0xf]  ;;  %v2606_v21 = vor.u32 %v3461_v19, %v2605_v18  ;;  %v3471_v37 = vld [vmem:[#allocation9 + $0x194] sm:$0xf0]  ;;  %v3470_v38 = vld [vmem:[#allocation9 + $0x194] sm:$0xf] }
  0x49   :  { %513 = vmatpush.bf16.msrb.mxu1 %v2554_v26  ;;  %v2687_v26 = vld [vmem:[#allocation9 + $0x1e8] sm:$0xf0]  ;;  %757 = vmatpush.bf16.msrb.mxu3 %v2694_v20  ;;  %v3460_v20 = vld [vmem:[#allocation9 + $0x144] sm:$0xf]  ;;  %v2589_v42 = vld [vmem:[#allocation9 + $0x120] sm:$0xf] }
  0x4a   :  { %v2610_v23 = vor.u32 %v3460_v20, %v2607_v22  ;;  %v3457_v43 = vld [vmem:[#allocation9 + $0x124] sm:$0xf0]  ;;  %v3452_v6 = vld [vmem:[#allocation9 + $0x104] sm:$0xf]  ;;  %v2575_v8 = vld [vmem:[#allocation9 + $0x108] sm:$0xf0] }
  0x4b   :  { %v2821_v10 = vld [vmem:[#allocation9 + $0x2f0] sm:$0xf]  ;;  %v3512_v18 = vld [vmem:[#allocation9 + $0x2e4] sm:$0xf]  ;;  %v2815_v19 = vld [vmem:[#allocation9 + $0x2e8] sm:$0xf0] }
  0x4c   :  { %500 = vmatpush.bf16.msrb.mxu0 %v2482_v31  ;;  %v2631_v31 = vld [vmem:[#allocation9 + $0x178] sm:$0xf0]  ;;  %v303_v20 = vld [vmem:[#allocation11] sm:$0x3]  ;;  %v2818_v22 = vor.u32 %v3512_v18, %v2815_v19  ;;  %v3507_v18 = vld [vmem:[#allocation9 + $0x2b4] sm:$0xf0] }
  0x4d   :  { %514 = vmatpush.bf16.msrb.mxu1 %v2546_v32  ;;  %v2690_v32 = vor.u32 %v3480_v25, %v2687_v26  ;;  %v2634_v34 = vor.u32 %v3466_v30, %v2631_v31  ;;  %758 = vmatpush.bf16.msrb.mxu3 %v2686_v28  ;;  %v3473_v25 = vld [vmem:[#allocation9 + $0x1a4] sm:$0xf0]  ;;  %v2655_v28 = vld [vmem:[#allocation9 + $0x1a8] sm:$0xf0]  ;;  %v2597_v30 = vld [vmem:[#allocation9 + $0x130] sm:$0xf] }
  0x4e   :  { %v2658_v29 = vor.u32 %v3472_v27, %v2655_v28  ;;  %v3459_v31 = vld [vmem:[#allocation9 + $0x134] sm:$0xf0]  ;;  %v305_v27 = vperm.slane %v303_v20, 0  ;;  %v3506_v19 = vld [vmem:[#allocation9 + $0x2b4] sm:$0xf]  ;;  %s2357_s11 = sshll.u32 %s3869_s10, 4  ;;  %s2358_s11 = int_to_ptr.vmem [resolvable:$true] %s2357_s11 }
  0x4f   :  { %v2598_v33 = vor.u32 %v3459_v31, %v2597_v30  ;;  %s2359_s14 = sshll.u32 %s4118_s7, 4  ;;  %s2360_s14 = int_to_ptr.hbm [resolvable:$true] %s2359_s14 }
  0x50   :  { %501 = vmatpush.bf16.msrb.mxu0 %v2474_v41  ;;  %v2622_v41 = vor.u32 %v3465_v40, %v2621_v39  ;;  %v2647_v40 = vld [vmem:[#allocation9 + $0x198] sm:$0xf0] }
  0x51   :  { %515 = vmatpush.bf16.msrb.mxu1 %v2538_v44  ;;  %v2678_v44 = vor.u32 %v3479_v36, %v2677_v35  ;;  %v2645_v36 = vld [vmem:[#allocation9 + $0x190] sm:$0xf] }
  0x52   :  { %744 = vmatpush.bf16.msrb.mxu2 %v2622_v41  ;;  %v2646_v39 = vor.u32 %v3471_v37, %v2645_v36  ;;  %v2650_v41 = vor.u32 %v3470_v38, %v2647_v40 }
  0x53   :  { %759 = vmatpush.bf16.msrb.mxu3 %v2678_v44  ;;  %v3456_v44 = vld [vmem:[#allocation9 + $0x124] sm:$0xf] }
  0x54   :  { %502 = vmatpush.bf16.msrb.mxu0 %v2466_v55 }
  0x55   :  { %516 = vmatpush.bf16.msrb.mxu1 %v2530_v56 }
  0x56   :  { %745 = vmatpush.bf16.msrb.mxu2 %v2614_v9  ;;  %v2578_v9 = vor.u32 %v3452_v6, %v2575_v8  ;;  %v3509_v6 = vld [vmem:[#allocation9 + $0x2c4] sm:$0xf0] }
  0x58   :  { %503 = vmatpush.bf16.msrb.mxu0 %v2458_v1  ;;  %v3477_v1 = vld [vmem:[#allocation9 + $0x1c4] sm:$0xf0] }
  0x59   :  { %517 = vmatpush.bf16.msrb.mxu1 %v2522_v4  ;;  %v2670_v3 = vor.u32 %v3477_v1, %v2669_v0  ;;  %v2671_v4 = vld [vmem:[#allocation9 + $0x1c8] sm:$0xf0]  ;;  %v3454_v0 = vld [vmem:[#allocation9 + $0x114] sm:$0xf] }
  0x5a   :  { %v2674_v5 = vor.u32 %v3476_v2, %v2671_v4  ;;  %746 = vmatpush.bf16.msrb.mxu2 %v2606_v21  ;;  %v2583_v2 = vld [vmem:[#allocation9 + $0x118] sm:$0xf0]  ;;  %v2573_v4 = vld [vmem:[#allocation9 + $0x100] sm:$0xf] }
  0x5b   :  { %760 = vmatpush.bf16.msrb.mxu3 %v2670_v3  ;;  %v2586_v3 = vor.u32 %v3454_v0, %v2583_v2  ;;  %v3496_v2 = vld [vmem:[#allocation9 + $0x264] sm:$0xf] }
  0x5c   :  { %504 = vmatpush.bf16.msrb.mxu0 %v2450_v13  ;;  %v3475_v13 = vld [vmem:[#allocation9 + $0x1b4] sm:$0xf0] }
  0x5d   :  { %518 = vmatpush.bf16.msrb.mxu1 %v2514_v16  ;;  %v2662_v15 = vor.u32 %v3475_v13, %v2661_v12  ;;  %v2663_v16 = vld [vmem:[#allocation9 + $0x1b8] sm:$0xf0]  ;;  %v3514_v12 = vld [vmem:[#allocation9 + $0x2f4] sm:$0xf] }
  0x5e   :  { %v2666_v17 = vor.u32 %v3474_v14, %v2663_v16  ;;  %747 = vmatpush.bf16.msrb.mxu2 %v2598_v33  ;;  %v2823_v14 = vld [vmem:[#allocation9 + $0x2f8] sm:$0xf0]  ;;  %v3513_v16 = vld [vmem:[#allocation9 + $0x2e4] sm:$0xf0] }
  0x5f   :  { %761 = vmatpush.bf16.msrb.mxu3 %v2662_v15  ;;  %v2813_v15 = vld [vmem:[#allocation9 + $0x2e0] sm:$0xf] }
  0x60   :  { %771 = vmatpush.bf16.msra.mxu0 %v2634_v34  ;;  %v2599_v34 = vld [vmem:[#allocation9 + $0x138] sm:$0xf0]  ;;  %v2814_v21 = vor.u32 %v3513_v16, %v2813_v15 }
  0x61   :  { %785 = vmatpush.bf16.msra.mxu1 %v2698_v24  ;;  %v2653_v24 = vld [vmem:[#allocation9 + $0x1a0] sm:$0xf]  ;;  %v2743_v15 = vld [vmem:[#allocation9 + $0x258] sm:$0xf0] }
  0x62   :  { %v2654_v26 = vor.u32 %v3473_v25, %v2653_v24 }
  0x64   :  { %772 = vmatpush.bf16.msra.mxu0 %v2626_v45  ;;  %762 = vmatpush.bf16.msrb.mxu3 %v2654_v26  ;;  %v2590_v45 = vor.u32 %v3457_v43, %v2589_v42 }
  0x65   :  { %786 = vmatpush.bf16.msra.mxu1 %v2690_v32  ;;  %v3458_v32 = vld [vmem:[#allocation9 + $0x134] sm:$0xf] }
  0x66   :  { %v2602_v35 = vor.u32 %v3458_v32, %v2599_v34  ;;  %748 = vmatpush.bf16.msrb.mxu2 %v2590_v45 }
  0x68   :  { %773 = vmatpush.bf16.msra.mxu0 %v2618_v11  ;;  %763 = vmatpush.bf16.msrb.mxu3 %v2646_v39  ;;  %v3515_v11 = vld [vmem:[#allocation9 + $0x2f4] sm:$0xf0] }
  0x69   :  { %787 = vmatpush.bf16.msra.mxu1 %v2682_v46  ;;  %v2591_v46 = vld [vmem:[#allocation9 + $0x128] sm:$0xf0]  ;;  %v2822_v13 = vor.u32 %v3515_v11, %v2821_v10  ;;  %v2741_v11 = vld [vmem:[#allocation9 + $0x250] sm:$0xf] }
  0x6a   :  { %v2594_v47 = vor.u32 %v3456_v44, %v2591_v46  ;;  %v3499_v46 = vld [vmem:[#allocation9 + $0x274] sm:$0xf0] }
  0x6c   :  { %774 = vmatpush.bf16.msra.mxu0 %v2610_v23  ;;  %v306_v23 = vperm.slane %v303_v20, 1 }
  0x6d   :  { %788 = vmatpush.bf16.msra.mxu1 %v2674_v5  ;;  %v3453_v5 = vld [vmem:[#allocation9 + $0x104] sm:$0xf0] }
  0x6e   :  { %v2574_v7 = vor.u32 %v3453_v5, %v2573_v4  ;;  %v2797_v5 = vld [vmem:[#allocation9 + $0x2c0] sm:$0xf] }
  0x6f   :  { %v2798_v8 = vor.u32 %v3509_v6, %v2797_v5  ;;  %v3486_v5 = vld [vmem:[#allocation9 + $0x214] sm:$0xf] }
  0x70   :  { %775 = vmatpush.bf16.msra.mxu0 %v2602_v35 }
  0x71   :  { %789 = vmatpush.bf16.msra.mxu1 %v2666_v17  ;;  %v2826_v17 = vor.u32 %v3514_v12, %v2823_v14  ;;  %v3495_v12 = vld [vmem:[#allocation9 + $0x254] sm:$0xf0]  ;;  %v3494_v14 = vld [vmem:[#allocation9 + $0x254] sm:$0xf] }
  0x72   :  { %v2746_v16 = vor.u32 %v3494_v14, %v2743_v15  ;;  %v2949_v15 = vld [vmem:[#allocation9 + $0x3f0] sm:$0xf] }
  0x74   :  { %776 = vmatpush.bf16.msra.mxu0 %v2594_v47  ;;  %v3498_v47 = vld [vmem:[#allocation9 + $0x274] sm:$0xf] }
  0x75   :  { %790 = vmatpush.bf16.msra.mxu1 %v2658_v29 }
  0x78   :  { %777 = vmatpush.bf16.msra.mxu0 %v2586_v3  ;;  %v2751_v3 = vld [vmem:[#allocation9 + $0x268] sm:$0xf0] }
  0x79   :  { %791 = vmatpush.bf16.msra.mxu1 %v2650_v41  ;;  %v2754_v4 = vor.u32 %v3496_v2, %v2751_v3  ;;  %v2709_v3 = vld [vmem:[#allocation9 + $0x210] sm:$0xf] }
  0x7c   :  { %778 = vmatpush.bf16.msra.mxu0 %v2578_v9  ;;  %v2799_v9 = vld [vmem:[#allocation9 + $0x2c8] sm:$0xf0] }
  0xbc   :  { %v238_v48 = vpop.f32.mrf.mxu0 }
  0xbd   :  { %v252_v49 = vpop.f32.mrf.mxu1  ;;  %v3934_v52 = vadd.f32 %v238_v48, %v139_v50  ;;  %v2637_v48 = vld [vmem:[#allocation9 + $0x180] sm:$0xf] }
  0xbe   :  { %v3936_v53 = vadd.f32 %v252_v49, %v140_v51  ;;  %v3469_v49 = vld [vmem:[#allocation9 + $0x184] sm:$0xf0] }
  0xbf   :  { %v257_v58 = vmax.f32 %v3934_v52, 0.0 }
  0xc0   :  { %v258_v60 = vmax.f32 %v3936_v53, 0.0 }
  0xc4   :  { %v240_v54 = vpop.f32.mrf.mxu0 }
  0xc5   :  { %v3938_v55 = vadd.f32 %v240_v54, %v139_v50  ;;  %v254_v56 = vpop.f32.mrf.mxu1  ;;  %v3468_v50 = vld [vmem:[#allocation9 + $0x184] sm:$0xf]  ;;  %v2639_v54 = vld [vmem:[#allocation9 + $0x188] sm:$0xf0] }
  0xc6   :  { %v3940_v57 = vadd.f32 %v254_v56, %v140_v51  ;;  %v2638_v51 = vor.u32 %v3469_v49, %v2637_v48  ;;  %v2642_v56 = vor.u32 %v3468_v50, %v2639_v54  ;;  %v2805_v49 = vld [vmem:[#allocation9 + $0x2d0] sm:$0xf]  ;;  %v3511_v50 = vld [vmem:[#allocation9 + $0x2d4] sm:$0xf0] }
  0xc7   :  { %v259_v59 = vmax.f32 %v3938_v55, 0.0  ;;  %v2759_v55 = vld [vmem:[#allocation9 + $0x278] sm:$0xf0]  ;;  %v2806_v54 = vor.u32 %v3511_v50, %v2805_v49  ;;  %v3488_v49 = vld [vmem:[#allocation9 + $0x224] sm:$0xf] }
  0xc8   :  { %v260_v61 = vmax.f32 %v3940_v57, 0.0  ;;  %764 = vmatpush.bf16.msrb.mxu3 %v2638_v51  ;;  %792 = vmatpush.bf16.msra.mxu1 %v2642_v56  ;;  %v3510_v51 = vld [vmem:[#allocation9 + $0x2d4] sm:$0xf]  ;;  %v2807_v56 = vld [vmem:[#allocation9 + $0x2d8] sm:$0xf0] }
  0xc9   :  { %v269_v62 = vpack.c.bf16 %v259_v59, %v257_v58  ;;  %v2810_v0 = vor.u32 %v3510_v51, %v2807_v56  ;;  %v2719_v51 = vld [vmem:[#allocation9 + $0x228] sm:$0xf0]  ;;  %v2765_v56 = vld [vmem:[#allocation9 + $0x280] sm:$0xf] }
  0xca   :  { %v270_v63 = vpack.c.bf16 %v260_v61, %v258_v60 }
  0xcb   :  { %477 = vmatmul.bf16.vlgmr.msra.gmra.mxu2 %v269_v62  ;;  %505 = vmatmul.bf16.vlgmr.msrb.gmra.mxu0 %v269_v62  ;;  %v2581_v62 = vld [vmem:[#allocation9 + $0x110] sm:$0xf] }
  0xcc   :  { %491 = vmatmul.bf16.vlgmr.msra.gmra.mxu3 %v270_v63  ;;  %519 = vmatmul.bf16.vlgmr.msrb.gmra.mxu1 %v270_v63  ;;  %v3455_v63 = vld [vmem:[#allocation9 + $0x114] sm:$0xf0] }
  0xcd   :  { %v2582_v1 = vor.u32 %v3455_v63, %v2581_v62  ;;  %1031 = vmatpush.bf16.msra.mxu3 %v2822_v13  ;;  %1059 = vmatpush.bf16.msrb.mxu1 %v2826_v17  ;;  %v2749_v62 = vld [vmem:[#allocation9 + $0x260] sm:$0xf]  ;;  %v3497_v63 = vld [vmem:[#allocation9 + $0x264] sm:$0xf0]  ;;  %v2742_v13 = vor.u32 %v3495_v12, %v2741_v11  ;;  %v2789_v17 = vld [vmem:[#allocation9 + $0x2b0] sm:$0xf] }
  0xce   :  { %v2790_v20 = vor.u32 %v3507_v18, %v2789_v17  ;;  %v3484_v11 = vld [vmem:[#allocation9 + $0x204] sm:$0xf]  ;;  %v3546_v17 = vld [vmem:[#allocation9 + $0x3f4] sm:$0xf] }
  0xcf   :  { %749 = vmatpush.bf16.msrb.mxu2 %v2582_v1  ;;  %v2750_v1 = vor.u32 %v3497_v63, %v2749_v62  ;;  %v3501_v62 = vld [vmem:[#allocation9 + $0x284] sm:$0xf0]  ;;  %v3500_v63 = vld [vmem:[#allocation9 + $0x284] sm:$0xf] }
  0xd1   :  { %1032 = vmatpush.bf16.msra.mxu3 %v2814_v21  ;;  %1060 = vmatpush.bf16.msrb.mxu1 %v2818_v22  ;;  %v2791_v21 = vld [vmem:[#allocation9 + $0x2b8] sm:$0xf0] }
  0xd2   :  { %v2794_v22 = vor.u32 %v3506_v19, %v2791_v21  ;;  %v2951_v19 = vld [vmem:[#allocation9 + $0x3f8] sm:$0xf0]  ;;  %v3545_v21 = vld [vmem:[#allocation9 + $0x3e4] sm:$0xf0] }
  0xd3   :  { %750 = vmatpush.bf16.msrb.mxu2 %v2574_v7  ;;  %v3508_v7 = vld [vmem:[#allocation9 + $0x2c4] sm:$0xf] }
  0xd4   :  { %v2802_v10 = vor.u32 %v3508_v7, %v2799_v9  ;;  %v2711_v7 = vld [vmem:[#allocation9 + $0x218] sm:$0xf0]  ;;  %v2701_v9 = vld [vmem:[#allocation9 + $0x200] sm:$0xf] }
  0xd5   :  { %1033 = vmatpush.bf16.msra.mxu3 %v2806_v54  ;;  %1061 = vmatpush.bf16.msrb.mxu1 %v2810_v0  ;;  %v2722_v54 = vor.u32 %v3488_v49, %v2719_v51  ;;  %v2766_v0 = vor.u32 %v3501_v62, %v2765_v56  ;;  %v3531_v51 = vld [vmem:[#allocation9 + $0x374] sm:$0xf0]  ;;  %v2933_v62 = vld [vmem:[#allocation9 + $0x3d0] sm:$0xf] }
  0xd9   :  { %1034 = vmatpush.bf16.msra.mxu3 %v2798_v8  ;;  %1062 = vmatpush.bf16.msrb.mxu1 %v2802_v10  ;;  %v2714_v8 = vor.u32 %v3486_v5, %v2711_v7  ;;  %v3485_v10 = vld [vmem:[#allocation9 + $0x204] sm:$0xf0]  ;;  %v3528_v7 = vld [vmem:[#allocation9 + $0x364] sm:$0xf] }
  0xda   :  { %v2702_v12 = vor.u32 %v3485_v10, %v2701_v9  ;;  %v2925_v10 = vld [vmem:[#allocation9 + $0x3c0] sm:$0xf] }
  0xdd   :  { %1035 = vmatpush.bf16.msra.mxu3 %v2790_v20  ;;  %1063 = vmatpush.bf16.msrb.mxu1 %v2794_v22  ;;  %v2941_v20 = vld [vmem:[#allocation9 + $0x3e0] sm:$0xf]  ;;  %v2954_v22 = vor.u32 %v3546_v17, %v2951_v19  ;;  %v3527_v17 = vld [vmem:[#allocation9 + $0x354] sm:$0xf0]  ;;  %v3526_v19 = vld [vmem:[#allocation9 + $0x354] sm:$0xf] }
 0x148   :  { %v506_v24 = vpop.f32.mrf.mxu0 }
 0x149   :  { %v520_v25 = vpop.f32.mrf.mxu1  ;;  %v507_v26 = vadd.f32 %v506_v24, %v306_v23  ;;  %v3493_v24 = vld [vmem:[#allocation9 + $0x244] sm:$0xf0] }
 0x14b   :  { %v521_v29 = vadd.f32 %v520_v25, %v507_v26  ;;  %v3492_v25 = vld [vmem:[#allocation9 + $0x244] sm:$0xf] }
 0x14d   :  { %v3956_v35 = vadd.f32 %v521_v29, %v258_v60  ;;  %v2781_v29 = vld [vmem:[#allocation9 + $0x2a0] sm:$0xf] }
 0x14e   :  { %v478_v28 = vpop.f32.mrf.mxu2 }
 0x14f   :  { %v492_v30 = vpop.f32.mrf.mxu3  ;;  %v479_v32 = vadd.f32 %v478_v28, %v305_v27  ;;  %v530_v40 = vmax.f32 %v3956_v35, 0.0 }
 0x150   :  { %v508_v31 = vpop.f32.mrf.mxu0 }
 0x151   :  { %v509_v33 = vadd.f32 %v508_v31, %v306_v23  ;;  %v522_v34 = vpop.f32.mrf.mxu1  ;;  %v493_v37 = vadd.f32 %v492_v30, %v479_v32  ;;  %v2733_v23 = vld [vmem:[#allocation9 + $0x240] sm:$0xf]  ;;  %v3505_v30 = vld [vmem:[#allocation9 + $0x2a4] sm:$0xf0]  ;;  %v3504_v32 = vld [vmem:[#allocation9 + $0x2a4] sm:$0xf] }
 0x152   :  { %v2734_v26 = vor.u32 %v3493_v24, %v2733_v23  ;;  %v2782_v31 = vor.u32 %v3505_v30, %v2781_v29  ;;  %v3544_v23 = vld [vmem:[#allocation9 + $0x3e4] sm:$0xf]  ;;  %v2943_v24 = vld [vmem:[#allocation9 + $0x3e8] sm:$0xf0] }
 0x153   :  { %v523_v36 = vadd.f32 %v522_v34, %v509_v33  ;;  %v3966_v44 = vadd.f32 %v493_v37, %v257_v58  ;;  %v2757_v58 = vld [vmem:[#allocation9 + $0x270] sm:$0xf]  ;;  %v2783_v33 = vld [vmem:[#allocation9 + $0x2a8] sm:$0xf0]  ;;  %v3491_v37 = vld [vmem:[#allocation9 + $0x234] sm:$0xf0] }
 0x154   :  { %v2758_v48 = vor.u32 %v3499_v46, %v2757_v58  ;;  %v2786_v34 = vor.u32 %v3504_v32, %v2783_v33  ;;  %1036 = vmatpush.bf16.msra.mxu3 %v2782_v31  ;;  %v3502_v58 = vld [vmem:[#allocation9 + $0x294] sm:$0xf] }
 0x155   :  { %v3960_v38 = vadd.f32 %v523_v36, %v260_v61  ;;  %v529_v61 = vmax.f32 %v3966_v44, 0.0  ;;  %v2725_v36 = vld [vmem:[#allocation9 + $0x230] sm:$0xf] }
 0x156   :  { %v480_v39 = vpop.f32.mrf.mxu2  ;;  %1017 = vmatpush.bf16.msra.mxu2 %v2758_v48  ;;  %1064 = vmatpush.bf16.msrb.mxu1 %v2786_v34 }
 0x157   :  { %v532_v41 = vmax.f32 %v3960_v38, 0.0  ;;  %v481_v42 = vadd.f32 %v480_v39, %v305_v27  ;;  %v494_v43 = vpop.f32.mrf.mxu3  ;;  %v2735_v27 = vld [vmem:[#allocation9 + $0x248] sm:$0xf0]  ;;  %v3490_v39 = vld [vmem:[#allocation9 + $0x234] sm:$0xf] }
 0x158   :  { %v2738_v28 = vor.u32 %v3492_v25, %v2735_v27  ;;  %v577_v25 = vld [vmem:[#allocation11 + $0x2] sm:$0x3]  ;;  %v2946_v27 = vor.u32 %v3544_v23, %v2943_v24  ;;  %v3539_v23 = vld [vmem:[#allocation9 + $0x3b4] sm:$0xf0]  ;;  %v3538_v24 = vld [vmem:[#allocation9 + $0x3b4] sm:$0xf] }
 0x159   :  { %v495_v53 = vadd.f32 %v494_v43, %v481_v42  ;;  %v542_v60 = vpack.c.bf16 %v532_v41, %v530_v40  ;;  %v2726_v42 = vor.u32 %v3491_v37, %v2725_v36  ;;  %v2727_v43 = vld [vmem:[#allocation9 + $0x238] sm:$0xf0]  ;;  %v579_v32 = vperm.slane %v577_v25, 0 }
 0x15a   :  { %1018 = vmatpush.bf16.msra.mxu2 %v2750_v1  ;;  %v2767_v1 = vld [vmem:[#allocation9 + $0x288] sm:$0xf0] }
 0x15b   :  { %v3974_v57 = vadd.f32 %v495_v53, %v259_v59  ;;  %765 = vmatmul.bf16.vlgmr.msrb.gmra.mxu3 %v542_v60  ;;  %793 = vmatmul.bf16.vlgmr.msra.gmra.mxu1 %v542_v60  ;;  %v2762_v59 = vor.u32 %v3498_v47, %v2759_v55  ;;  %v2730_v53 = vor.u32 %v3490_v39, %v2727_v43  ;;  %v2773_v60 = vld [vmem:[#allocation9 + $0x290] sm:$0xf]  ;;  %v2775_v47 = vld [vmem:[#allocation9 + $0x298] sm:$0xf0]  ;;  %v2717_v55 = vld [vmem:[#allocation9 + $0x220] sm:$0xf] }
 0x15c   :  { %v2778_v48 = vor.u32 %v3502_v58, %v2775_v47  ;;  %v2770_v2 = vor.u32 %v3500_v63, %v2767_v1  ;;  %v3543_v63 = vld [vmem:[#allocation9 + $0x3d4] sm:$0xf0] }
 0x15d   :  { %v531_v45 = vmax.f32 %v3974_v57, 0.0  ;;  %1045 = vmatpush.bf16.msrb.mxu0 %v2762_v59  ;;  %v3489_v59 = vld [vmem:[#allocation9 + $0x224] sm:$0xf0]  ;;  %v2887_v57 = vld [vmem:[#allocation9 + $0x378] sm:$0xf0]  ;;  %v2934_v1 = vor.u32 %v3543_v63, %v2933_v62 }
 0x15e   :  { %1019 = vmatpush.bf16.msra.mxu2 %v2742_v13  ;;  %v2718_v50 = vor.u32 %v3489_v59, %v2717_v55  ;;  %1065 = vmatpush.bf16.msrb.mxu1 %v2778_v48  ;;  %v2703_v13 = vld [vmem:[#allocation9 + $0x208] sm:$0xf0]  ;;  %v3520_v62 = vld [vmem:[#allocation9 + $0x324] sm:$0xf] }
 0x15f   :  { %v541_v52 = vpack.c.bf16 %v531_v45, %v529_v61  ;;  %v2706_v14 = vor.u32 %v3484_v11, %v2703_v13  ;;  %v3541_v11 = vld [vmem:[#allocation9 + $0x3c4] sm:$0xf0] }
 0x160   :  { %v2926_v13 = vor.u32 %v3541_v11, %v2925_v10  ;;  %v3518_v10 = vld [vmem:[#allocation9 + $0x314] sm:$0xf] }
 0x161   :  { %751 = vmatmul.bf16.vlgmr.msrb.gmra.mxu2 %v541_v52  ;;  %779 = vmatmul.bf16.vlgmr.msra.gmra.mxu0 %v541_v52  ;;  %v3503_v52 = vld [vmem:[#allocation9 + $0x294] sm:$0xf0] }
 0x162   :  { %1046 = vmatpush.bf16.msrb.mxu0 %v2754_v4  ;;  %1020 = vmatpush.bf16.msra.mxu2 %v2734_v26  ;;  %v2774_v46 = vor.u32 %v3503_v52, %v2773_v60  ;;  %v3487_v4 = vld [vmem:[#allocation9 + $0x214] sm:$0xf0]  ;;  %v2942_v26 = vor.u32 %v3545_v21, %v2941_v20  ;;  %v2871_v20 = vld [vmem:[#allocation9 + $0x358] sm:$0xf0] }
 0x163   :  { %v2710_v6 = vor.u32 %v3487_v4, %v2709_v3  ;;  %1066 = vmatpush.bf16.msrb.mxu1 %v2770_v2  ;;  %v2935_v2 = vld [vmem:[#allocation9 + $0x3d8] sm:$0xf0]  ;;  %v2877_v3 = vld [vmem:[#allocation9 + $0x360] sm:$0xf]  ;;  %v3529_v4 = vld [vmem:[#allocation9 + $0x364] sm:$0xf0]  ;;  %v2874_v21 = vor.u32 %v3526_v19, %v2871_v20 }
 0x164   :  { %1037 = vmatpush.bf16.msra.mxu3 %v2774_v46  ;;  %v3077_v20 = vld [vmem:[#allocation9 + $0x4f0] sm:$0xf] }
 0x166   :  { %1047 = vmatpush.bf16.msrb.mxu0 %v2746_v16  ;;  %1021 = vmatpush.bf16.msra.mxu2 %v2726_v42  ;;  %v3547_v16 = vld [vmem:[#allocation9 + $0x3f4] sm:$0xf0] }
 0x167   :  { %v2950_v18 = vor.u32 %v3547_v16, %v2949_v15  ;;  %1333 = vmatpush.bf16.msra.mxu1 %v2954_v22  ;;  %v2869_v16 = vld [vmem:[#allocation9 + $0x350] sm:$0xf] }
 0x168   :  { %1038 = vmatpush.bf16.msra.mxu3 %v2766_v0  ;;  %v3542_v0 = vld [vmem:[#allocation9 + $0x3d4] sm:$0xf]  ;;  %v2917_v22 = vld [vmem:[#allocation9 + $0x3b0] sm:$0xf] }
 0x169   :  { %v2938_v5 = vor.u32 %v3542_v0, %v2935_v2  ;;  %v2847_v0 = vld [vmem:[#allocation9 + $0x328] sm:$0xf0]  ;;  %v2893_v2 = vld [vmem:[#allocation9 + $0x380] sm:$0xf] }
 0x16a   :  { %1048 = vmatpush.bf16.msrb.mxu0 %v2738_v28  ;;  %1022 = vmatpush.bf16.msra.mxu2 %v2718_v50  ;;  %v580_v28 = vperm.slane %v577_v25, 1  ;;  %v2918_v25 = vor.u32 %v3539_v23, %v2917_v22  ;;  %v3578_v22 = vld [vmem:[#allocation9 + $0x4f4] sm:$0xf] }
 0x16b   :  { %1334 = vmatpush.bf16.msra.mxu1 %v2946_v27 }
 0x16c   :  { %1305 = vmatpush.bf16.msrb.mxu3 %v2950_v18  ;;  %v2870_v18 = vor.u32 %v3527_v17, %v2869_v16  ;;  %v3516_v16 = vld [vmem:[#allocation9 + $0x304] sm:$0xf] }
 0x16e   :  { %1049 = vmatpush.bf16.msrb.mxu0 %v2730_v53  ;;  %1023 = vmatpush.bf16.msra.mxu2 %v2710_v6  ;;  %v2878_v6 = vor.u32 %v3529_v4, %v2877_v3  ;;  %v3533_v3 = vld [vmem:[#allocation9 + $0x384] sm:$0xf0]  ;;  %v3532_v4 = vld [vmem:[#allocation9 + $0x384] sm:$0xf] }
 0x16f   :  { %1335 = vmatpush.bf16.msra.mxu1 %v2938_v5  ;;  %v2894_v5 = vor.u32 %v3533_v3, %v2893_v2  ;;  %v3061_v3 = vld [vmem:[#allocation9 + $0x4d0] sm:$0xf] }
 0x170   :  { %1306 = vmatpush.bf16.msrb.mxu3 %v2942_v26  ;;  %v2919_v26 = vld [vmem:[#allocation9 + $0x3b8] sm:$0xf0] }
 0x171   :  { %v2922_v27 = vor.u32 %v3538_v24, %v2919_v26  ;;  %v3079_v24 = vld [vmem:[#allocation9 + $0x4f8] sm:$0xf0]  ;;  %v3577_v26 = vld [vmem:[#allocation9 + $0x4e4] sm:$0xf0] }
 0x172   :  { %1050 = vmatpush.bf16.msrb.mxu0 %v2722_v54  ;;  %1024 = vmatpush.bf16.msra.mxu2 %v2702_v12  ;;  %v3530_v54 = vld [vmem:[#allocation9 + $0x374] sm:$0xf]  ;;  %v3540_v12 = vld [vmem:[#allocation9 + $0x3c4] sm:$0xf] }
 0x174   :  { %1307 = vmatpush.bf16.msrb.mxu3 %v2934_v1  ;;  %v2850_v1 = vor.u32 %v3520_v62, %v2847_v0  ;;  %v3563_v0 = vld [vmem:[#allocation9 + $0x474] sm:$0xf0] }
 0x176   :  { %1051 = vmatpush.bf16.msrb.mxu0 %v2714_v8  ;;  %v2879_v8 = vld [vmem:[#allocation9 + $0x368] sm:$0xf0] }
 0x177   :  { %v2882_v9 = vor.u32 %v3528_v7, %v2879_v8  ;;  %v2837_v8 = vld [vmem:[#allocation9 + $0x310] sm:$0xf] }
 0x178   :  { %1308 = vmatpush.bf16.msrb.mxu3 %v2926_v13 }
 0x17a   :  { %1052 = vmatpush.bf16.msrb.mxu0 %v2706_v14  ;;  %v2927_v14 = vld [vmem:[#allocation9 + $0x3c8] sm:$0xf0] }
 0x17b   :  { %v2930_v15 = vor.u32 %v3540_v12, %v2927_v14  ;;  %v2839_v12 = vld [vmem:[#allocation9 + $0x318] sm:$0xf0]  ;;  %v2829_v14 = vld [vmem:[#allocation9 + $0x300] sm:$0xf] }
 0x17c   :  { %1309 = vmatpush.bf16.msrb.mxu3 %v2918_v25  ;;  %v2842_v13 = vor.u32 %v3518_v10, %v2839_v12  ;;  %v3069_v25 = vld [vmem:[#allocation9 + $0x4e0] sm:$0xf]  ;;  %v3560_v12 = vld [vmem:[#allocation9 + $0x464] sm:$0xf] }
 0x17d   :  { %1336 = vmatpush.bf16.msra.mxu1 %v2930_v15  ;;  %v3517_v15 = vld [vmem:[#allocation9 + $0x304] sm:$0xf0] }
 0x17e   :  { %v2830_v17 = vor.u32 %v3517_v15, %v2829_v14  ;;  %v3053_v15 = vld [vmem:[#allocation9 + $0x4c0] sm:$0xf] }
 0x181   :  { %1337 = vmatpush.bf16.msra.mxu1 %v2922_v27  ;;  %v3082_v27 = vor.u32 %v3578_v22, %v3079_v24  ;;  %v3559_v22 = vld [vmem:[#allocation9 + $0x454] sm:$0xf0]  ;;  %v3558_v24 = vld [vmem:[#allocation9 + $0x454] sm:$0xf] }
 0x1d8   :  { %v794_v29 = vpop.f32.mrf.mxu1 }
 0x1de   :  { %v780_v30 = vpop.f32.mrf.mxu0  ;;  %v766_v33 = vpop.f32.mrf.mxu3 }
 0x1df   :  { %v781_v31 = vadd.f32 %v780_v30, %v580_v28  ;;  %v3524_v30 = vld [vmem:[#allocation9 + $0x344] sm:$0xf] }
 0x1e0   :  { %v796_v43 = vpop.f32.mrf.mxu1 }
 0x1e1   :  { %v795_v36 = vadd.f32 %v794_v29, %v781_v31  ;;  %v3525_v29 = vld [vmem:[#allocation9 + $0x344] sm:$0xf0] }
 0x1e3   :  { %v3984_v53 = vadd.f32 %v795_v36, %v530_v40  ;;  %v3537_v36 = vld [vmem:[#allocation9 + $0x3a4] sm:$0xf0] }
 0x1e4   :  { %v752_v34 = vpop.f32.mrf.mxu2 }
 0x1e5   :  { %v753_v39 = vadd.f32 %v752_v34, %v579_v32  ;;  %v804_v47 = vmax.f32 %v3984_v53, 0.0  ;;  %v2909_v34 = vld [vmem:[#allocation9 + $0x3a0] sm:$0xf] }
 0x1e6   :  { %v782_v37 = vpop.f32.mrf.mxu0  ;;  %v768_v59 = vpop.f32.mrf.mxu3 }
 0x1e7   :  { %v783_v42 = vadd.f32 %v782_v37, %v580_v28  ;;  %v767_v52 = vadd.f32 %v766_v33, %v753_v39  ;;  %v2861_v28 = vld [vmem:[#allocation9 + $0x340] sm:$0xf]  ;;  %v2910_v37 = vor.u32 %v3537_v36, %v2909_v34  ;;  %v3536_v39 = vld [vmem:[#allocation9 + $0x3a4] sm:$0xf] }
 0x1e8   :  { %v2862_v31 = vor.u32 %v3525_v29, %v2861_v28  ;;  %v3576_v28 = vld [vmem:[#allocation9 + $0x4e4] sm:$0xf]  ;;  %v3071_v29 = vld [vmem:[#allocation9 + $0x4e8] sm:$0xf0] }
 0x1e9   :  { %v797_v60 = vadd.f32 %v796_v43, %v783_v42  ;;  %v3994_v49 = vadd.f32 %v767_v52, %v529_v61  ;;  %v2885_v61 = vld [vmem:[#allocation9 + $0x370] sm:$0xf]  ;;  %v2911_v42 = vld [vmem:[#allocation9 + $0x3a8] sm:$0xf0]  ;;  %v3523_v52 = vld [vmem:[#allocation9 + $0x334] sm:$0xf0]  ;;  %1310 = vmatpush.bf16.msrb.mxu3 %v2910_v37 }
 0x1ea   :  { %v2886_v56 = vor.u32 %v3531_v51, %v2885_v61  ;;  %v2914_v43 = vor.u32 %v3536_v39, %v2911_v42  ;;  %v3534_v61 = vld [vmem:[#allocation9 + $0x394] sm:$0xf] }
 0x1eb   :  { %v3988_v58 = vadd.f32 %v797_v60, %v532_v41  ;;  %v803_v41 = vmax.f32 %v3994_v49, 0.0  ;;  %v2853_v60 = vld [vmem:[#allocation9 + $0x330] sm:$0xf] }
 0x1ec   :  { %v754_v46 = vpop.f32.mrf.mxu2  ;;  %1291 = vmatpush.bf16.msrb.mxu2 %v2886_v56  ;;  %1338 = vmatpush.bf16.msra.mxu1 %v2914_v43 }
 0x1ed   :  { %v806_v48 = vmax.f32 %v3988_v58, 0.0  ;;  %v755_v55 = vadd.f32 %v754_v46, %v579_v32  ;;  %v2863_v32 = vld [vmem:[#allocation9 + $0x348] sm:$0xf0]  ;;  %v3522_v46 = vld [vmem:[#allocation9 + $0x334] sm:$0xf] }
 0x1ee   :  { %v2866_v33 = vor.u32 %v3524_v30, %v2863_v32  ;;  %v851_v30 = vld [vmem:[#allocation11 + $0x4] sm:$0x3]  ;;  %v3074_v32 = vor.u32 %v3576_v28, %v3071_v29  ;;  %v3571_v28 = vld [vmem:[#allocation9 + $0x4b4] sm:$0xf0]  ;;  %v3570_v29 = vld [vmem:[#allocation9 + $0x4b4] sm:$0xf] }
 0x1ef   :  { %v816_v35 = vpack.c.bf16 %v806_v48, %v804_v47  ;;  %v769_v40 = vadd.f32 %v768_v59, %v755_v55  ;;  %v2854_v55 = vor.u32 %v3523_v52, %v2853_v60  ;;  %v2855_v59 = vld [vmem:[#allocation9 + $0x338] sm:$0xf0]  ;;  %v853_v39 = vperm.slane %v851_v30, 0 }
 0x1f0   :  { %1292 = vmatpush.bf16.msrb.mxu2 %v2878_v6  ;;  %v2895_v6 = vld [vmem:[#allocation9 + $0x388] sm:$0xf0] }
 0x1f1   :  { %v4002_v38 = vadd.f32 %v769_v40, %v531_v45  ;;  %1039 = vmatmul.bf16.vlgmr.msra.gmra.mxu3 %v816_v35  ;;  %1067 = vmatmul.bf16.vlgmr.msrb.gmra.mxu1 %v816_v35  ;;  %v2890_v45 = vor.u32 %v3530_v54, %v2887_v57  ;;  %v2858_v35 = vor.u32 %v3522_v46, %v2855_v59  ;;  %v2901_v40 = vld [vmem:[#allocation9 + $0x390] sm:$0xf]  ;;  %v2903_v54 = vld [vmem:[#allocation9 + $0x398] sm:$0xf0]  ;;  %v2845_v57 = vld [vmem:[#allocation9 + $0x320] sm:$0xf] }
 0x1f2   :  { %v2906_v56 = vor.u32 %v3534_v61, %v2903_v54  ;;  %v2898_v7 = vor.u32 %v3532_v4, %v2895_v6  ;;  %v3575_v4 = vld [vmem:[#allocation9 + $0x4d4] sm:$0xf0] }
 0x1f3   :  { %v805_v50 = vmax.f32 %v4002_v38, 0.0  ;;  %1319 = vmatpush.bf16.msra.mxu0 %v2890_v45  ;;  %v3521_v45 = vld [vmem:[#allocation9 + $0x324] sm:$0xf0]  ;;  %v3015_v38 = vld [vmem:[#allocation9 + $0x478] sm:$0xf0]  ;;  %v3062_v6 = vor.u32 %v3575_v4, %v3061_v3 }
 0x1f4   :  { %1293 = vmatpush.bf16.msrb.mxu2 %v2870_v18  ;;  %v2846_v63 = vor.u32 %v3521_v45, %v2845_v57  ;;  %1339 = vmatpush.bf16.msra.mxu1 %v2906_v56  ;;  %v2831_v18 = vld [vmem:[#allocation9 + $0x308] sm:$0xf0]  ;;  %v3552_v3 = vld [vmem:[#allocation9 + $0x424] sm:$0xf] }
 0x1f5   :  { %v815_v44 = vpack.c.bf16 %v805_v50, %v803_v41  ;;  %v2834_v19 = vor.u32 %v3516_v16, %v2831_v18  ;;  %v3573_v16 = vld [vmem:[#allocation9 + $0x4c4] sm:$0xf0] }
 0x1f6   :  { %v3054_v18 = vor.u32 %v3573_v16, %v3053_v15  ;;  %v3550_v15 = vld [vmem:[#allocation9 + $0x414] sm:$0xf] }
 0x1f7   :  { %1025 = vmatmul.bf16.vlgmr.msra.gmra.mxu2 %v815_v44  ;;  %1053 = vmatmul.bf16.vlgmr.msrb.gmra.mxu0 %v815_v44  ;;  %v3535_v44 = vld [vmem:[#allocation9 + $0x394] sm:$0xf0] }
 0x1f8   :  { %1320 = vmatpush.bf16.msra.mxu0 %v2882_v9  ;;  %1294 = vmatpush.bf16.msrb.mxu2 %v2862_v31  ;;  %v2902_v51 = vor.u32 %v3535_v44, %v2901_v40  ;;  %v3519_v9 = vld [vmem:[#allocation9 + $0x314] sm:$0xf0]  ;;  %v3070_v31 = vor.u32 %v3577_v26, %v3069_v25  ;;  %v2999_v25 = vld [vmem:[#allocation9 + $0x458] sm:$0xf0] }
 0x1f9   :  { %v2838_v11 = vor.u32 %v3519_v9, %v2837_v8  ;;  %1340 = vmatpush.bf16.msra.mxu1 %v2898_v7  ;;  %v3063_v7 = vld [vmem:[#allocation9 + $0x4d8] sm:$0xf0]  ;;  %v3005_v8 = vld [vmem:[#allocation9 + $0x460] sm:$0xf]  ;;  %v3561_v9 = vld [vmem:[#allocation9 + $0x464] sm:$0xf0]  ;;  %v3002_v26 = vor.u32 %v3558_v24, %v2999_v25 }
 0x1fa   :  { %1311 = vmatpush.bf16.msrb.mxu3 %v2902_v51  ;;  %v3205_v25 = vld [vmem:[#allocation9 + $0x5f0] sm:$0xf] }
 0x1fc   :  { %1321 = vmatpush.bf16.msra.mxu0 %v2874_v21  ;;  %1295 = vmatpush.bf16.msrb.mxu2 %v2854_v55  ;;  %v3579_v21 = vld [vmem:[#allocation9 + $0x4f4] sm:$0xf0] }
 0x1fd   :  { %v3078_v23 = vor.u32 %v3579_v21, %v3077_v20  ;;  %1607 = vmatpush.bf16.msrb.mxu1 %v3082_v27  ;;  %v2997_v21 = vld [vmem:[#allocation9 + $0x450] sm:$0xf] }
 0x1fe   :  { %1312 = vmatpush.bf16.msrb.mxu3 %v2894_v5  ;;  %v3574_v5 = vld [vmem:[#allocation9 + $0x4d4] sm:$0xf]  ;;  %v3045_v27 = vld [vmem:[#allocation9 + $0x4b0] sm:$0xf] }
 0x1ff   :  { %v3066_v10 = vor.u32 %v3574_v5, %v3063_v7  ;;  %v2975_v5 = vld [vmem:[#allocation9 + $0x428] sm:$0xf0]  ;;  %v3021_v7 = vld [vmem:[#allocation9 + $0x480] sm:$0xf] }
 0x200   :  { %1322 = vmatpush.bf16.msra.mxu0 %v2866_v33  ;;  %1296 = vmatpush.bf16.msrb.mxu2 %v2846_v63  ;;  %v854_v33 = vperm.slane %v851_v30, 1  ;;  %v3046_v30 = vor.u32 %v3571_v28, %v3045_v27  ;;  %v3610_v27 = vld [vmem:[#allocation9 + $0x5f4] sm:$0xf] }
 0x201   :  { %1608 = vmatpush.bf16.msrb.mxu1 %v3074_v32 }
 0x202   :  { %1579 = vmatpush.bf16.msra.mxu3 %v3078_v23  ;;  %v2998_v23 = vor.u32 %v3559_v22, %v2997_v21  ;;  %v3548_v21 = vld [vmem:[#allocation9 + $0x404] sm:$0xf] }
 0x204   :  { %1323 = vmatpush.bf16.msra.mxu0 %v2858_v35  ;;  %1297 = vmatpush.bf16.msrb.mxu2 %v2838_v11  ;;  %v3006_v11 = vor.u32 %v3561_v9, %v3005_v8  ;;  %v3565_v8 = vld [vmem:[#allocation9 + $0x484] sm:$0xf0]  ;;  %v3564_v9 = vld [vmem:[#allocation9 + $0x484] sm:$0xf] }
 0x205   :  { %1609 = vmatpush.bf16.msrb.mxu1 %v3066_v10  ;;  %v3022_v10 = vor.u32 %v3565_v8, %v3021_v7  ;;  %v3189_v8 = vld [vmem:[#allocation9 + $0x5d0] sm:$0xf] }
 0x206   :  { %1580 = vmatpush.bf16.msra.mxu3 %v3070_v31  ;;  %v3047_v31 = vld [vmem:[#allocation9 + $0x4b8] sm:$0xf0] }
 0x207   :  { %v3050_v32 = vor.u32 %v3570_v29, %v3047_v31  ;;  %v3207_v29 = vld [vmem:[#allocation9 + $0x5f8] sm:$0xf0]  ;;  %v3609_v31 = vld [vmem:[#allocation9 + $0x5e4] sm:$0xf0] }
 0x208   :  { %1324 = vmatpush.bf16.msra.mxu0 %v2850_v1  ;;  %1298 = vmatpush.bf16.msrb.mxu2 %v2830_v17  ;;  %v3562_v1 = vld [vmem:[#allocation9 + $0x474] sm:$0xf]  ;;  %v3572_v17 = vld [vmem:[#allocation9 + $0x4c4] sm:$0xf] }
 0x20a   :  { %1581 = vmatpush.bf16.msra.mxu3 %v3062_v6  ;;  %v2978_v6 = vor.u32 %v3552_v3, %v2975_v5  ;;  %v3595_v5 = vld [vmem:[#allocation9 + $0x574] sm:$0xf0] }
 0x20c   :  { %1325 = vmatpush.bf16.msra.mxu0 %v2842_v13  ;;  %v3007_v13 = vld [vmem:[#allocation9 + $0x468] sm:$0xf0] }
 0x20d   :  { %v3010_v14 = vor.u32 %v3560_v12, %v3007_v13  ;;  %v2965_v13 = vld [vmem:[#allocation9 + $0x410] sm:$0xf] }
 0x20e   :  { %1582 = vmatpush.bf16.msra.mxu3 %v3054_v18 }
 0x210   :  { %1326 = vmatpush.bf16.msra.mxu0 %v2834_v19  ;;  %v3055_v19 = vld [vmem:[#allocation9 + $0x4c8] sm:$0xf0] }
 0x211   :  { %v3058_v20 = vor.u32 %v3572_v17, %v3055_v19  ;;  %v2967_v17 = vld [vmem:[#allocation9 + $0x418] sm:$0xf0]  ;;  %v2957_v19 = vld [vmem:[#allocation9 + $0x400] sm:$0xf] }
 0x212   :  { %1583 = vmatpush.bf16.msra.mxu3 %v3046_v30  ;;  %v2970_v18 = vor.u32 %v3550_v15, %v2967_v17  ;;  %v3197_v30 = vld [vmem:[#allocation9 + $0x5e0] sm:$0xf]  ;;  %v3592_v17 = vld [vmem:[#allocation9 + $0x564] sm:$0xf] }
 0x213   :  { %1610 = vmatpush.bf16.msrb.mxu1 %v3058_v20  ;;  %v3549_v20 = vld [vmem:[#allocation9 + $0x404] sm:$0xf0] }
 0x214   :  { %v2958_v22 = vor.u32 %v3549_v20, %v2957_v19  ;;  %v3181_v20 = vld [vmem:[#allocation9 + $0x5c0] sm:$0xf] }
 0x217   :  { %1611 = vmatpush.bf16.msrb.mxu1 %v3050_v32  ;;  %v3210_v32 = vor.u32 %v3610_v27, %v3207_v29  ;;  %v3591_v27 = vld [vmem:[#allocation9 + $0x554] sm:$0xf0]  ;;  %v3590_v29 = vld [vmem:[#allocation9 + $0x554] sm:$0xf] }
 0x26e   :  { %v1068_v34 = vpop.f32.mrf.mxu1 }
 0x274   :  { %v1054_v36 = vpop.f32.mrf.mxu0  ;;  %v1040_v42 = vpop.f32.mrf.mxu3 }
 0x275   :  { %v1055_v37 = vadd.f32 %v1054_v36, %v854_v33  ;;  %v3556_v36 = vld [vmem:[#allocation9 + $0x444] sm:$0xf] }
 0x276   :  { %v1070_v59 = vpop.f32.mrf.mxu1 }
 0x277   :  { %v1069_v60 = vadd.f32 %v1068_v34, %v1055_v37  ;;  %v3557_v34 = vld [vmem:[#allocation9 + $0x444] sm:$0xf0] }
 0x279   :  { %v4012_v35 = vadd.f32 %v1069_v60, %v804_v47  ;;  %v3569_v60 = vld [vmem:[#allocation9 + $0x4a4] sm:$0xf0] }
 0x27a   :  { %v1026_v43 = vpop.f32.mrf.mxu2 }
 0x27b   :  { %v1027_v46 = vadd.f32 %v1026_v43, %v853_v39  ;;  %v1078_v54 = vmax.f32 %v4012_v35, 0.0  ;;  %v3037_v43 = vld [vmem:[#allocation9 + $0x4a0] sm:$0xf] }
 0x27c   :  { %v1056_v52 = vpop.f32.mrf.mxu0  ;;  %v1042_v45 = vpop.f32.mrf.mxu3 }
 0x27d   :  { %v1057_v55 = vadd.f32 %v1056_v52, %v854_v33  ;;  %v1041_v44 = vadd.f32 %v1040_v42, %v1027_v46  ;;  %v2989_v33 = vld [vmem:[#allocation9 + $0x440] sm:$0xf]  ;;  %v3038_v52 = vor.u32 %v3569_v60, %v3037_v43  ;;  %v3568_v46 = vld [vmem:[#allocation9 + $0x4a4] sm:$0xf] }
 0x27e   :  { %v2990_v37 = vor.u32 %v3557_v34, %v2989_v33  ;;  %v3608_v33 = vld [vmem:[#allocation9 + $0x5e4] sm:$0xf]  ;;  %v3199_v34 = vld [vmem:[#allocation9 + $0x5e8] sm:$0xf0] }
 0x27f   :  { %v1071_v40 = vadd.f32 %v1070_v59, %v1057_v55  ;;  %v4022_v62 = vadd.f32 %v1041_v44, %v803_v41  ;;  %v3013_v41 = vld [vmem:[#allocation9 + $0x470] sm:$0xf]  ;;  %v3039_v55 = vld [vmem:[#allocation9 + $0x4a8] sm:$0xf0]  ;;  %v3555_v44 = vld [vmem:[#allocation9 + $0x434] sm:$0xf0]  ;;  %1584 = vmatpush.bf16.msra.mxu3 %v3038_v52 }
 0x280   :  { %v3014_v2 = vor.u32 %v3563_v0, %v3013_v41  ;;  %v3042_v59 = vor.u32 %v3568_v46, %v3039_v55  ;;  %v3566_v41 = vld [vmem:[#allocation9 + $0x494] sm:$0xf] }
 0x281   :  { %v4016_v61 = vadd.f32 %v1071_v40, %v806_v48  ;;  %v1077_v48 = vmax.f32 %v4022_v62, 0.0  ;;  %v2981_v40 = vld [vmem:[#allocation9 + $0x430] sm:$0xf] }
 0x282   :  { %v1028_v51 = vpop.f32.mrf.mxu2  ;;  %1565 = vmatpush.bf16.msra.mxu2 %v3014_v2  ;;  %1612 = vmatpush.bf16.msrb.mxu1 %v3042_v59 }
 0x283   :  { %v1080_v56 = vmax.f32 %v4016_v61, 0.0  ;;  %v1029_v57 = vadd.f32 %v1028_v51, %v853_v39  ;;  %v2991_v39 = vld [vmem:[#allocation9 + $0x448] sm:$0xf0]  ;;  %v3554_v51 = vld [vmem:[#allocation9 + $0x434] sm:$0xf] }
 0x284   :  { %v2994_v42 = vor.u32 %v3556_v36, %v2991_v39  ;;  %v1125_v36 = vld [vmem:[#allocation11 + $0x6] sm:$0x3]  ;;  %v3202_v39 = vor.u32 %v3608_v33, %v3199_v34  ;;  %v3603_v33 = vld [vmem:[#allocation9 + $0x5b4] sm:$0xf0]  ;;  %v3602_v34 = vld [vmem:[#allocation9 + $0x5b4] sm:$0xf] }
 0x285   :  { %v1090_v53 = vpack.c.bf16 %v1080_v56, %v1078_v54  ;;  %v1043_v47 = vadd.f32 %v1042_v45, %v1029_v57  ;;  %v2982_v57 = vor.u32 %v3555_v44, %v2981_v40  ;;  %v2983_v45 = vld [vmem:[#allocation9 + $0x438] sm:$0xf0]  ;;  %v1127_v46 = vperm.slane %v1125_v36, 0 }
 0x286   :  { %1566 = vmatpush.bf16.msra.mxu2 %v3006_v11  ;;  %v3023_v11 = vld [vmem:[#allocation9 + $0x488] sm:$0xf0] }
 0x287   :  { %v4030_v58 = vadd.f32 %v1043_v47, %v805_v50  ;;  %1313 = vmatmul.bf16.vlgmr.msrb.gmra.mxu3 %v1090_v53  ;;  %1341 = vmatmul.bf16.vlgmr.msra.gmra.mxu1 %v1090_v53  ;;  %v3018_v50 = vor.u32 %v3562_v1, %v3015_v38  ;;  %v2986_v53 = vor.u32 %v3554_v51, %v2983_v45  ;;  %v3029_v47 = vld [vmem:[#allocation9 + $0x490] sm:$0xf]  ;;  %v3031_v1 = vld [vmem:[#allocation9 + $0x498] sm:$0xf0]  ;;  %v2973_v38 = vld [vmem:[#allocation9 + $0x420] sm:$0xf] }
 0x288   :  { %v3034_v2 = vor.u32 %v3566_v41, %v3031_v1  ;;  %v3026_v12 = vor.u32 %v3564_v9, %v3023_v11  ;;  %v3607_v9 = vld [vmem:[#allocation9 + $0x5d4] sm:$0xf0] }
 0x289   :  { %v1079_v63 = vmax.f32 %v4030_v58, 0.0  ;;  %1593 = vmatpush.bf16.msrb.mxu0 %v3018_v50  ;;  %v3553_v50 = vld [vmem:[#allocation9 + $0x424] sm:$0xf0]  ;;  %v3143_v58 = vld [vmem:[#allocation9 + $0x578] sm:$0xf0]  ;;  %v3190_v11 = vor.u32 %v3607_v9, %v3189_v8 }
 0x28a   :  { %1567 = vmatpush.bf16.msra.mxu2 %v2998_v23  ;;  %v2974_v4 = vor.u32 %v3553_v50, %v2973_v38  ;;  %1613 = vmatpush.bf16.msrb.mxu1 %v3034_v2  ;;  %v2959_v23 = vld [vmem:[#allocation9 + $0x408] sm:$0xf0]  ;;  %v3584_v8 = vld [vmem:[#allocation9 + $0x524] sm:$0xf] }
 0x28b   :  { %v1089_v49 = vpack.c.bf16 %v1079_v63, %v1077_v48  ;;  %v2962_v24 = vor.u32 %v3548_v21, %v2959_v23  ;;  %v3605_v21 = vld [vmem:[#allocation9 + $0x5c4] sm:$0xf0] }
 0x28c   :  { %v3182_v23 = vor.u32 %v3605_v21, %v3181_v20  ;;  %v3582_v20 = vld [vmem:[#allocation9 + $0x514] sm:$0xf] }
 0x28d   :  { %1299 = vmatmul.bf16.vlgmr.msrb.gmra.mxu2 %v1089_v49  ;;  %1327 = vmatmul.bf16.vlgmr.msra.gmra.mxu0 %v1089_v49  ;;  %v3567_v49 = vld [vmem:[#allocation9 + $0x494] sm:$0xf0] }
 0x28e   :  { %1594 = vmatpush.bf16.msrb.mxu0 %v3010_v14  ;;  %1568 = vmatpush.bf16.msra.mxu2 %v2990_v37  ;;  %v3030_v0 = vor.u32 %v3567_v49, %v3029_v47  ;;  %v3551_v14 = vld [vmem:[#allocation9 + $0x414] sm:$0xf0]  ;;  %v3198_v37 = vor.u32 %v3609_v31, %v3197_v30  ;;  %v3127_v30 = vld [vmem:[#allocation9 + $0x558] sm:$0xf0] }
 0x28f   :  { %v2966_v16 = vor.u32 %v3551_v14, %v2965_v13  ;;  %1614 = vmatpush.bf16.msrb.mxu1 %v3026_v12  ;;  %v3191_v12 = vld [vmem:[#allocation9 + $0x5d8] sm:$0xf0]  ;;  %v3133_v13 = vld [vmem:[#allocation9 + $0x560] sm:$0xf]  ;;  %v3593_v14 = vld [vmem:[#allocation9 + $0x564] sm:$0xf0]  ;;  %v3130_v31 = vor.u32 %v3590_v29, %v3127_v30 }
 0x290   :  { %1585 = vmatpush.bf16.msra.mxu3 %v3030_v0  ;;  %v3333_v30 = vld [vmem:[#allocation9 + $0x6f0] sm:$0xf] }
 0x292   :  { %1595 = vmatpush.bf16.msrb.mxu0 %v3002_v26  ;;  %1569 = vmatpush.bf16.msra.mxu2 %v2982_v57  ;;  %v3611_v26 = vld [vmem:[#allocation9 + $0x5f4] sm:$0xf0] }
 0x293   :  { %v3206_v28 = vor.u32 %v3611_v26, %v3205_v25  ;;  %1881 = vmatpush.bf16.msra.mxu1 %v3210_v32  ;;  %v3125_v26 = vld [vmem:[#allocation9 + $0x550] sm:$0xf] }
 0x294   :  { %1586 = vmatpush.bf16.msra.mxu3 %v3022_v10  ;;  %v3606_v10 = vld [vmem:[#allocation9 + $0x5d4] sm:$0xf]  ;;  %v3173_v32 = vld [vmem:[#allocation9 + $0x5b0] sm:$0xf] }
 0x295   :  { %v3194_v15 = vor.u32 %v3606_v10, %v3191_v12  ;;  %v3103_v10 = vld [vmem:[#allocation9 + $0x528] sm:$0xf0]  ;;  %v3149_v12 = vld [vmem:[#allocation9 + $0x580] sm:$0xf] }
 0x296   :  { %1596 = vmatpush.bf16.msrb.mxu0 %v2994_v42  ;;  %1570 = vmatpush.bf16.msra.mxu2 %v2974_v4  ;;  %v1128_v42 = vperm.slane %v1125_v36, 1  ;;  %v3174_v36 = vor.u32 %v3603_v33, %v3173_v32  ;;  %v3642_v32 = vld [vmem:[#allocation9 + $0x6f4] sm:$0xf] }
 0x297   :  { %1882 = vmatpush.bf16.msra.mxu1 %v3202_v39 }
 0x298   :  { %1853 = vmatpush.bf16.msrb.mxu3 %v3206_v28  ;;  %v3126_v28 = vor.u32 %v3591_v27, %v3125_v26  ;;  %v3580_v26 = vld [vmem:[#allocation9 + $0x504] sm:$0xf] }
 0x29a   :  { %1597 = vmatpush.bf16.msrb.mxu0 %v2986_v53  ;;  %1571 = vmatpush.bf16.msra.mxu2 %v2966_v16  ;;  %v3134_v16 = vor.u32 %v3593_v14, %v3133_v13  ;;  %v3597_v13 = vld [vmem:[#allocation9 + $0x584] sm:$0xf0]  ;;  %v3596_v14 = vld [vmem:[#allocation9 + $0x584] sm:$0xf] }
 0x29b   :  { %1883 = vmatpush.bf16.msra.mxu1 %v3194_v15  ;;  %v3150_v15 = vor.u32 %v3597_v13, %v3149_v12  ;;  %v3317_v13 = vld [vmem:[#allocation9 + $0x6d0] sm:$0xf] }
 0x29c   :  { %1854 = vmatpush.bf16.msrb.mxu3 %v3198_v37  ;;  %v3175_v37 = vld [vmem:[#allocation9 + $0x5b8] sm:$0xf0] }
 0x29d   :  { %v3178_v39 = vor.u32 %v3602_v34, %v3175_v37  ;;  %v3335_v34 = vld [vmem:[#allocation9 + $0x6f8] sm:$0xf0]  ;;  %v3641_v37 = vld [vmem:[#allocation9 + $0x6e4] sm:$0xf0] }
 0x29e   :  { %1598 = vmatpush.bf16.msrb.mxu0 %v2978_v6  ;;  %1572 = vmatpush.bf16.msra.mxu2 %v2958_v22  ;;  %v3594_v6 = vld [vmem:[#allocation9 + $0x574] sm:$0xf]  ;;  %v3604_v22 = vld [vmem:[#allocation9 + $0x5c4] sm:$0xf] }
 0x2a0   :  { %1855 = vmatpush.bf16.msrb.mxu3 %v3190_v11  ;;  %v3106_v11 = vor.u32 %v3584_v8, %v3103_v10  ;;  %v3627_v10 = vld [vmem:[#allocation9 + $0x674] sm:$0xf0] }
 0x2a2   :  { %1599 = vmatpush.bf16.msrb.mxu0 %v2970_v18  ;;  %v3135_v18 = vld [vmem:[#allocation9 + $0x568] sm:$0xf0] }
 0x2a3   :  { %v3138_v19 = vor.u32 %v3592_v17, %v3135_v18  ;;  %v3093_v18 = vld [vmem:[#allocation9 + $0x510] sm:$0xf] }
 0x2a4   :  { %1856 = vmatpush.bf16.msrb.mxu3 %v3182_v23 }
 0x2a6   :  { %1600 = vmatpush.bf16.msrb.mxu0 %v2962_v24  ;;  %v3183_v24 = vld [vmem:[#allocation9 + $0x5c8] sm:$0xf0] }
 0x2a7   :  { %v3186_v25 = vor.u32 %v3604_v22, %v3183_v24  ;;  %v3095_v22 = vld [vmem:[#allocation9 + $0x518] sm:$0xf0]  ;;  %v3085_v24 = vld [vmem:[#allocation9 + $0x500] sm:$0xf] }
 0x2a8   :  { %1857 = vmatpush.bf16.msrb.mxu3 %v3174_v36  ;;  %v3098_v23 = vor.u32 %v3582_v20, %v3095_v22  ;;  %v3325_v36 = vld [vmem:[#allocation9 + $0x6e0] sm:$0xf]  ;;  %v3624_v22 = vld [vmem:[#allocation9 + $0x664] sm:$0xf] }
 0x2a9   :  { %1884 = vmatpush.bf16.msra.mxu1 %v3186_v25  ;;  %v3581_v25 = vld [vmem:[#allocation9 + $0x504] sm:$0xf0] }
 0x2aa   :  { %v3086_v27 = vor.u32 %v3581_v25, %v3085_v24  ;;  %v3309_v25 = vld [vmem:[#allocation9 + $0x6c0] sm:$0xf] }
 0x2ad   :  { %1885 = vmatpush.bf16.msra.mxu1 %v3178_v39  ;;  %v3338_v39 = vor.u32 %v3642_v32, %v3335_v34  ;;  %v3623_v32 = vld [vmem:[#allocation9 + $0x654] sm:$0xf0]  ;;  %v3622_v34 = vld [vmem:[#allocation9 + $0x654] sm:$0xf] }
 0x304   :  { %v1342_v43 = vpop.f32.mrf.mxu1 }
 0x30a   :  { %v1328_v60 = vpop.f32.mrf.mxu0  ;;  %v1314_v55 = vpop.f32.mrf.mxu3 }
 0x30b   :  { %v1329_v52 = vadd.f32 %v1328_v60, %v1128_v42  ;;  %v3588_v60 = vld [vmem:[#allocation9 + $0x544] sm:$0xf] }
 0x30c   :  { %v1344_v45 = vpop.f32.mrf.mxu1 }
 0x30d   :  { %v1343_v40 = vadd.f32 %v1342_v43, %v1329_v52  ;;  %v3589_v43 = vld [vmem:[#allocation9 + $0x544] sm:$0xf0] }
 0x30f   :  { %v4040_v53 = vadd.f32 %v1343_v40, %v1078_v54  ;;  %v3601_v40 = vld [vmem:[#allocation9 + $0x5a4] sm:$0xf0] }
 0x310   :  { %v1300_v59 = vpop.f32.mrf.mxu2 }
 0x311   :  { %v1301_v51 = vadd.f32 %v1300_v59, %v1127_v46  ;;  %v1352_v1 = vmax.f32 %v4040_v53, 0.0  ;;  %v3165_v59 = vld [vmem:[#allocation9 + $0x5a0] sm:$0xf] }
 0x312   :  { %v1330_v44 = vpop.f32.mrf.mxu0  ;;  %v1316_v50 = vpop.f32.mrf.mxu3 }
 0x313   :  { %v1331_v57 = vadd.f32 %v1330_v44, %v1128_v42  ;;  %v1315_v49 = vadd.f32 %v1314_v55, %v1301_v51  ;;  %v3117_v42 = vld [vmem:[#allocation9 + $0x540] sm:$0xf]  ;;  %v3166_v44 = vor.u32 %v3601_v40, %v3165_v59  ;;  %v3600_v51 = vld [vmem:[#allocation9 + $0x5a4] sm:$0xf] }
 0x314   :  { %v3118_v52 = vor.u32 %v3589_v43, %v3117_v42  ;;  %v3640_v42 = vld [vmem:[#allocation9 + $0x6e4] sm:$0xf]  ;;  %v3327_v43 = vld [vmem:[#allocation9 + $0x6e8] sm:$0xf0] }
 0x315   :  { %v1345_v47 = vadd.f32 %v1344_v45, %v1331_v57  ;;  %v4050_v3 = vadd.f32 %v1315_v49, %v1077_v48  ;;  %v3141_v48 = vld [vmem:[#allocation9 + $0x570] sm:$0xf]  ;;  %v3167_v57 = vld [vmem:[#allocation9 + $0x5a8] sm:$0xf0]  ;;  %v3587_v49 = vld [vmem:[#allocation9 + $0x534] sm:$0xf0]  ;;  %1858 = vmatpush.bf16.msrb.mxu3 %v3166_v44 }
 0x316   :  { %v3142_v7 = vor.u32 %v3595_v5, %v3141_v48  ;;  %v3170_v45 = vor.u32 %v3600_v51, %v3167_v57  ;;  %v3598_v48 = vld [vmem:[#allocation9 + $0x594] sm:$0xf] }
 0x317   :  { %v4044_v41 = vadd.f32 %v1345_v47, %v1080_v56  ;;  %v1351_v56 = vmax.f32 %v4050_v3, 0.0  ;;  %v3109_v47 = vld [vmem:[#allocation9 + $0x530] sm:$0xf] }
 0x318   :  { %v1302_v0 = vpop.f32.mrf.mxu2  ;;  %1839 = vmatpush.bf16.msrb.mxu2 %v3142_v7  ;;  %1886 = vmatpush.bf16.msra.mxu1 %v3170_v45 }
 0x319   :  { %v1354_v2 = vmax.f32 %v4044_v41, 0.0  ;;  %v1303_v38 = vadd.f32 %v1302_v0, %v1127_v46  ;;  %v3119_v46 = vld [vmem:[#allocation9 + $0x548] sm:$0xf0]  ;;  %v3586_v0 = vld [vmem:[#allocation9 + $0x534] sm:$0xf] }
 0x31a   :  { %v3122_v55 = vor.u32 %v3588_v60, %v3119_v46  ;;  %v1399_v60 = vld [vmem:[#allocation11 + $0x8] sm:$0x3]  ;;  %v3330_v46 = vor.u32 %v3640_v42, %v3327_v43  ;;  %v3635_v42 = vld [vmem:[#allocation9 + $0x6b4] sm:$0xf0]  ;;  %v3634_v43 = vld [vmem:[#allocation9 + $0x6b4] sm:$0xf] }
 0x31b   :  { %v1364_v35 = vpack.c.bf16 %v1354_v2, %v1352_v1  ;;  %v1317_v54 = vadd.f32 %v1316_v50, %v1303_v38  ;;  %v3110_v38 = vor.u32 %v3587_v49, %v3109_v47  ;;  %v3111_v50 = vld [vmem:[#allocation9 + $0x538] sm:$0xf0]  ;;  %v1401_v51 = vperm.slane %v1399_v60, 0 }
 0x31c   :  { %1840 = vmatpush.bf16.msrb.mxu2 %v3134_v16  ;;  %v3151_v16 = vld [vmem:[#allocation9 + $0x588] sm:$0xf0] }
 0x31d   :  { %v4058_v61 = vadd.f32 %v1317_v54, %v1079_v63  ;;  %1587 = vmatmul.bf16.vlgmr.msra.gmra.mxu3 %v1364_v35  ;;  %1615 = vmatmul.bf16.vlgmr.msrb.gmra.mxu1 %v1364_v35  ;;  %v3146_v63 = vor.u32 %v3594_v6, %v3143_v58  ;;  %v3114_v35 = vor.u32 %v3586_v0, %v3111_v50  ;;  %v3157_v54 = vld [vmem:[#allocation9 + $0x590] sm:$0xf]  ;;  %v3159_v6 = vld [vmem:[#allocation9 + $0x598] sm:$0xf0]  ;;  %v3101_v58 = vld [vmem:[#allocation9 + $0x520] sm:$0xf] }
 0x31e   :  { %v3162_v7 = vor.u32 %v3598_v48, %v3159_v6  ;;  %v3154_v17 = vor.u32 %v3596_v14, %v3151_v16  ;;  %v3639_v14 = vld [vmem:[#allocation9 + $0x6d4] sm:$0xf0] }
 0x31f   :  { %v1353_v4 = vmax.f32 %v4058_v61, 0.0  ;;  %1867 = vmatpush.bf16.msra.mxu0 %v3146_v63  ;;  %v3585_v63 = vld [vmem:[#allocation9 + $0x524] sm:$0xf0]  ;;  %v3271_v61 = vld [vmem:[#allocation9 + $0x678] sm:$0xf0]  ;;  %v3318_v16 = vor.u32 %v3639_v14, %v3317_v13 }
 0x320   :  { %1841 = vmatpush.bf16.msrb.mxu2 %v3126_v28  ;;  %v3102_v9 = vor.u32 %v3585_v63, %v3101_v58  ;;  %1887 = vmatpush.bf16.msra.mxu1 %v3162_v7  ;;  %v3087_v28 = vld [vmem:[#allocation9 + $0x508] sm:$0xf0]  ;;  %v3616_v13 = vld [vmem:[#allocation9 + $0x624] sm:$0xf] }
 0x321   :  { %v1363_v62 = vpack.c.bf16 %v1353_v4, %v1351_v56  ;;  %v3090_v29 = vor.u32 %v3580_v26, %v3087_v28  ;;  %v3637_v26 = vld [vmem:[#allocation9 + $0x6c4] sm:$0xf0] }
 0x322   :  { %v3310_v28 = vor.u32 %v3637_v26, %v3309_v25  ;;  %v3614_v25 = vld [vmem:[#allocation9 + $0x614] sm:$0xf] }
 0x323   :  { %1573 = vmatmul.bf16.vlgmr.msra.gmra.mxu2 %v1363_v62  ;;  %1601 = vmatmul.bf16.vlgmr.msrb.gmra.mxu0 %v1363_v62  ;;  %v3599_v62 = vld [vmem:[#allocation9 + $0x594] sm:$0xf0] }
 0x324   :  { %1868 = vmatpush.bf16.msra.mxu0 %v3138_v19  ;;  %1842 = vmatpush.bf16.msrb.mxu2 %v3118_v52  ;;  %v3158_v5 = vor.u32 %v3599_v62, %v3157_v54  ;;  %v3583_v19 = vld [vmem:[#allocation9 + $0x514] sm:$0xf0]  ;;  %v3326_v52 = vor.u32 %v3641_v37, %v3325_v36  ;;  %v3255_v36 = vld [vmem:[#allocation9 + $0x658] sm:$0xf0] }
 0x325   :  { %v3094_v21 = vor.u32 %v3583_v19, %v3093_v18  ;;  %1888 = vmatpush.bf16.msra.mxu1 %v3154_v17  ;;  %v3319_v17 = vld [vmem:[#allocation9 + $0x6d8] sm:$0xf0]  ;;  %v3261_v18 = vld [vmem:[#allocation9 + $0x660] sm:$0xf]  ;;  %v3625_v19 = vld [vmem:[#allocation9 + $0x664] sm:$0xf0]  ;;  %v3258_v37 = vor.u32 %v3622_v34, %v3255_v36 }
 0x326   :  { %1859 = vmatpush.bf16.msrb.mxu3 %v3158_v5  ;;  %v3659_v36 = vld [vmem:[#allocation12 + $0x78] sm:$0xff] }
 0x328   :  { %1869 = vmatpush.bf16.msra.mxu0 %v3130_v31  ;;  %1843 = vmatpush.bf16.msrb.mxu2 %v3110_v38  ;;  %v3643_v31 = vld [vmem:[#allocation9 + $0x6f4] sm:$0xf0] }
 0x329   :  { %v3334_v33 = vor.u32 %v3643_v31, %v3333_v30  ;;  %2155 = vmatpush.bf16.msrb.mxu1 %v3338_v39  ;;  %v3253_v31 = vld [vmem:[#allocation9 + $0x650] sm:$0xf] }
 0x32a   :  { %1860 = vmatpush.bf16.msrb.mxu3 %v3150_v15  ;;  %v3638_v15 = vld [vmem:[#allocation9 + $0x6d4] sm:$0xf]  ;;  %v3301_v39 = vld [vmem:[#allocation9 + $0x6b0] sm:$0xf] }
 0x32b   :  { %v3322_v20 = vor.u32 %v3638_v15, %v3319_v17  ;;  %v3231_v15 = vld [vmem:[#allocation9 + $0x628] sm:$0xf0]  ;;  %v3277_v17 = vld [vmem:[#allocation9 + $0x680] sm:$0xf] }
 0x32c   :  { %1870 = vmatpush.bf16.msra.mxu0 %v3122_v55  ;;  %1844 = vmatpush.bf16.msrb.mxu2 %v3102_v9  ;;  %v1402_v55 = vperm.slane %v1399_v60, 1  ;;  %v3302_v60 = vor.u32 %v3635_v42, %v3301_v39  ;;  %v1673_v39 = vld [vmem:[#allocation11 + $0xa] sm:$0x3] }
 0x32d   :  { %2156 = vmatpush.bf16.msrb.mxu1 %v3330_v46  ;;  %v1676_v42 = vperm.slane %v1673_v39, 1 }
 0x32e   :  { %2127 = vmatpush.bf16.msra.mxu3 %v3334_v33  ;;  %v3254_v33 = vor.u32 %v3623_v32, %v3253_v31  ;;  %v3612_v31 = vld [vmem:[#allocation9 + $0x604] sm:$0xf] }
 0x330   :  { %1871 = vmatpush.bf16.msra.mxu0 %v3114_v35  ;;  %1845 = vmatpush.bf16.msrb.mxu2 %v3094_v21  ;;  %v3262_v21 = vor.u32 %v3625_v19, %v3261_v18  ;;  %v3629_v18 = vld [vmem:[#allocation9 + $0x684] sm:$0xf0]  ;;  %v3628_v19 = vld [vmem:[#allocation9 + $0x684] sm:$0xf] }
 0x331   :  { %2157 = vmatpush.bf16.msrb.mxu1 %v3322_v20  ;;  %v3278_v20 = vor.u32 %v3629_v18, %v3277_v17 }
 0x332   :  { %2128 = vmatpush.bf16.msra.mxu3 %v3326_v52  ;;  %v3303_v52 = vld [vmem:[#allocation9 + $0x6b8] sm:$0xf0] }
 0x333   :  { %v3306_v46 = vor.u32 %v3634_v43, %v3303_v52 }
 0x334   :  { %1872 = vmatpush.bf16.msra.mxu0 %v3106_v11  ;;  %1846 = vmatpush.bf16.msrb.mxu2 %v3086_v27  ;;  %v3626_v11 = vld [vmem:[#allocation9 + $0x674] sm:$0xf]  ;;  %v3636_v27 = vld [vmem:[#allocation9 + $0x6c4] sm:$0xf] }
 0x336   :  { %2129 = vmatpush.bf16.msra.mxu3 %v3318_v16  ;;  %v3234_v16 = vor.u32 %v3616_v13, %v3231_v15  ;;  %v3652_v13 = vld [vmem:[#allocation12 + $0x40] sm:$0xff] }
 0x337   :  { %v3644_v15 = vld [vmem:[#allocation12] sm:$0xff] }
 0x338   :  { %1873 = vmatpush.bf16.msra.mxu0 %v3098_v23  ;;  %v3263_v23 = vld [vmem:[#allocation9 + $0x668] sm:$0xf0] }
 0x339   :  { %v3266_v24 = vor.u32 %v3624_v22, %v3263_v23  ;;  %v3221_v23 = vld [vmem:[#allocation9 + $0x610] sm:$0xf] }
 0x33a   :  { %2130 = vmatpush.bf16.msra.mxu3 %v3310_v28 }
 0x33c   :  { %1874 = vmatpush.bf16.msra.mxu0 %v3090_v29  ;;  %v3311_v29 = vld [vmem:[#allocation9 + $0x6c8] sm:$0xf0] }
 0x33d   :  { %v3314_v30 = vor.u32 %v3636_v27, %v3311_v29  ;;  %v3223_v27 = vld [vmem:[#allocation9 + $0x618] sm:$0xf0]  ;;  %v3213_v29 = vld [vmem:[#allocation9 + $0x600] sm:$0xf] }
 0x33e   :  { %2131 = vmatpush.bf16.msra.mxu3 %v3302_v60  ;;  %v3226_v28 = vor.u32 %v3614_v25, %v3223_v27 }
 0x33f   :  { %2158 = vmatpush.bf16.msrb.mxu1 %v3314_v30  ;;  %v3613_v30 = vld [vmem:[#allocation9 + $0x604] sm:$0xf0] }
 0x340   :  { %v3214_v32 = vor.u32 %v3613_v30, %v3213_v29 }
 0x343   :  { %2159 = vmatpush.bf16.msrb.mxu1 %v3306_v46  ;;  %v1675_v46 = vperm.slane %v1673_v39, 0 }
 0x39a   :  { %v1616_v59 = vpop.f32.mrf.mxu1 }
 0x3a0   :  { %v1602_v40 = vpop.f32.mrf.mxu0  ;;  %v1588_v57 = vpop.f32.mrf.mxu3 }
 0x3a1   :  { %v1603_v44 = vadd.f32 %v1602_v40, %v1402_v55  ;;  %v3620_v40 = vld [vmem:[#allocation9 + $0x644] sm:$0xf] }
 0x3a2   :  { %v1618_v50 = vpop.f32.mrf.mxu1 }
 0x3a3   :  { %v1617_v47 = vadd.f32 %v1616_v59, %v1603_v44  ;;  %v3621_v59 = vld [vmem:[#allocation9 + $0x644] sm:$0xf0] }
 0x3a5   :  { %v4068_v35 = vadd.f32 %v1617_v47, %v1352_v1  ;;  %v3633_v47 = vld [vmem:[#allocation9 + $0x6a4] sm:$0xf0] }
 0x3a6   :  { %v1574_v45 = vpop.f32.mrf.mxu2 }
 0x3a7   :  { %v1575_v0 = vadd.f32 %v1574_v45, %v1401_v51  ;;  %v1626_v6 = vmax.f32 %v4068_v35, 0.0  ;;  %v3293_v45 = vld [vmem:[#allocation9 + $0x6a0] sm:$0xf] }
 0x3a8   :  { %v1604_v49 = vpop.f32.mrf.mxu0  ;;  %v1590_v63 = vpop.f32.mrf.mxu3 }
 0x3a9   :  { %v1605_v38 = vadd.f32 %v1604_v49, %v1402_v55  ;;  %v1589_v62 = vadd.f32 %v1588_v57, %v1575_v0  ;;  %v3245_v55 = vld [vmem:[#allocation9 + $0x640] sm:$0xf]  ;;  %v3294_v49 = vor.u32 %v3633_v47, %v3293_v45  ;;  %v3632_v0 = vld [vmem:[#allocation9 + $0x6a4] sm:$0xf] }
 0x3aa   :  { %v3246_v44 = vor.u32 %v3621_v59, %v3245_v55 }
 0x3ab   :  { %v1619_v54 = vadd.f32 %v1618_v50, %v1605_v38  ;;  %v4078_v8 = vadd.f32 %v1589_v62, %v1351_v56  ;;  %v3269_v56 = vld [vmem:[#allocation9 + $0x670] sm:$0xf]  ;;  %v3295_v38 = vld [vmem:[#allocation9 + $0x6a8] sm:$0xf0]  ;;  %v3619_v62 = vld [vmem:[#allocation9 + $0x634] sm:$0xf0]  ;;  %2132 = vmatpush.bf16.msra.mxu3 %v3294_v49 }
 0x3ac   :  { %v3270_v12 = vor.u32 %v3627_v10, %v3269_v56  ;;  %v3298_v50 = vor.u32 %v3632_v0, %v3295_v38  ;;  %v3630_v56 = vld [vmem:[#allocation9 + $0x694] sm:$0xf] }
 0x3ad   :  { %v4072_v48 = vadd.f32 %v1619_v54, %v1354_v2  ;;  %v1625_v2 = vmax.f32 %v4078_v8, 0.0  ;;  %v3237_v54 = vld [vmem:[#allocation9 + $0x630] sm:$0xf] }
 0x3ae   :  { %v1576_v5 = vpop.f32.mrf.mxu2  ;;  %2113 = vmatpush.bf16.msra.mxu2 %v3270_v12  ;;  %2160 = vmatpush.bf16.msrb.mxu1 %v3298_v50  ;;  %v3656_v8 = vld [vmem:[#allocation12 + $0x60] sm:$0xff] }
 0x3af   :  { %v1628_v7 = vmax.f32 %v4072_v48, 0.0  ;;  %v1577_v58 = vadd.f32 %v1576_v5, %v1401_v51  ;;  %v3247_v51 = vld [vmem:[#allocation9 + $0x648] sm:$0xf0]  ;;  %v3618_v5 = vld [vmem:[#allocation9 + $0x634] sm:$0xf] }
 0x3b0   :  { %v3250_v57 = vor.u32 %v3620_v40, %v3247_v51  ;;  %v3651_v48 = vld [vmem:[#allocation12 + $0x38] sm:$0xff] }
 0x3b1   :  { %v1638_v53 = vpack.c.bf16 %v1628_v7, %v1626_v6  ;;  %v1591_v1 = vadd.f32 %v1590_v63, %v1577_v58  ;;  %v3238_v58 = vor.u32 %v3619_v62, %v3237_v54  ;;  %v3239_v63 = vld [vmem:[#allocation9 + $0x638] sm:$0xf0] }
 0x3b2   :  { %2114 = vmatpush.bf16.msra.mxu2 %v3262_v21  ;;  %v3279_v21 = vld [vmem:[#allocation9 + $0x688] sm:$0xf0] }
 0x3b3   :  { %v4086_v41 = vadd.f32 %v1591_v1, %v1353_v4  ;;  %1861 = vmatmul.bf16.vlgmr.msrb.gmra.mxu3 %v1638_v53  ;;  %1889 = vmatmul.bf16.vlgmr.msra.gmra.mxu1 %v1638_v53  ;;  %v3274_v4 = vor.u32 %v3626_v11, %v3271_v61  ;;  %v3242_v53 = vor.u32 %v3618_v5, %v3239_v63  ;;  %v3285_v1 = vld [vmem:[#allocation9 + $0x690] sm:$0xf]  ;;  %v3287_v11 = vld [vmem:[#allocation9 + $0x698] sm:$0xf0]  ;;  %v3229_v61 = vld [vmem:[#allocation9 + $0x620] sm:$0xf] }
 0x3b4   :  { %v3290_v12 = vor.u32 %v3630_v56, %v3287_v11  ;;  %v3282_v22 = vor.u32 %v3628_v19, %v3279_v21  ;;  %v3655_v11 = vld [vmem:[#allocation12 + $0x58] sm:$0xff] }
 0x3b5   :  { %v1627_v9 = vmax.f32 %v4086_v41, 0.0  ;;  %2141 = vmatpush.bf16.msrb.mxu0 %v3274_v4  ;;  %v3617_v4 = vld [vmem:[#allocation9 + $0x624] sm:$0xf0]  ;;  %v3648_v41 = vld [vmem:[#allocation12 + $0x20] sm:$0xff] }
 0x3b6   :  { %2115 = vmatpush.bf16.msra.mxu2 %v3254_v33  ;;  %v3230_v14 = vor.u32 %v3617_v4, %v3229_v61  ;;  %2161 = vmatpush.bf16.msrb.mxu1 %v3290_v12  ;;  %v3215_v33 = vld [vmem:[#allocation9 + $0x608] sm:$0xf0]  ;;  %v3653_v61 = vld [vmem:[#allocation12 + $0x48] sm:$0xff]  ;;  %v3646_v4 = vld [vmem:[#allocation12 + $0x10] sm:$0xff] }
 0x3b7   :  { %v1637_v3 = vpack.c.bf16 %v1627_v9, %v1625_v2  ;;  %v3218_v34 = vor.u32 %v3612_v31, %v3215_v33  ;;  %v3647_v12 = vld [vmem:[#allocation12 + $0x18] sm:$0xff] }
 0x3b9   :  { %1847 = vmatmul.bf16.vlgmr.msrb.gmra.mxu2 %v1637_v3  ;;  %1875 = vmatmul.bf16.vlgmr.msra.gmra.mxu0 %v1637_v3  ;;  %v3631_v3 = vld [vmem:[#allocation9 + $0x694] sm:$0xf0] }
 0x3ba   :  { %2142 = vmatpush.bf16.msrb.mxu0 %v3266_v24  ;;  %2116 = vmatpush.bf16.msra.mxu2 %v3246_v44  ;;  %v3286_v10 = vor.u32 %v3631_v3, %v3285_v1  ;;  %v3615_v24 = vld [vmem:[#allocation9 + $0x614] sm:$0xf0] }
 0x3bb   :  { %v3222_v26 = vor.u32 %v3615_v24, %v3221_v23  ;;  %2162 = vmatpush.bf16.msrb.mxu1 %v3282_v22 }
 0x3bc   :  { %2133 = vmatpush.bf16.msra.mxu3 %v3286_v10  ;;  %v3650_v10 = vld [vmem:[#allocation12 + $0x30] sm:$0xff] }
 0x3be   :  { %2143 = vmatpush.bf16.msrb.mxu0 %v3258_v37  ;;  %2117 = vmatpush.bf16.msra.mxu2 %v3238_v58  ;;  %v3658_v37 = vld [vmem:[#allocation12 + $0x70] sm:$0xff] }
 0x3c0   :  { %2134 = vmatpush.bf16.msra.mxu3 %v3278_v20 }
 0x3c2   :  { %2144 = vmatpush.bf16.msrb.mxu0 %v3250_v57  ;;  %2118 = vmatpush.bf16.msra.mxu2 %v3230_v14  ;;  %v3645_v14 = vld [vmem:[#allocation12 + $0x8] sm:$0xff] }
 0x3c4   :  { %2333 = vmatpush.bf16.msrb.mxu3 %v3659_v36 }
 0x3c6   :  { %2145 = vmatpush.bf16.msrb.mxu0 %v3242_v53  ;;  %2119 = vmatpush.bf16.msra.mxu2 %v3222_v26 }
 0x3c8   :  { %2334 = vmatpush.bf16.msrb.mxu3 %v3658_v37 }
 0x3ca   :  { %2146 = vmatpush.bf16.msrb.mxu0 %v3234_v16  ;;  %2120 = vmatpush.bf16.msra.mxu2 %v3214_v32  ;;  %v1947_v16 = vld [vmem:[#allocation11 + $0xc] sm:$0x3] }
 0x3cb   :  { %v1950_v17 = vperm.slane %v1947_v16, 1  ;;  %v1949_v21 = vperm.slane %v1947_v16, 0 }
 0x3ce   :  { %2147 = vmatpush.bf16.msrb.mxu0 %v3226_v28  ;;  %2319 = vmatpush.bf16.msrb.mxu2 %v3651_v48 }
 0x3d2   :  { %2148 = vmatpush.bf16.msrb.mxu0 %v3218_v34  ;;  %2320 = vmatpush.bf16.msrb.mxu2 %v3650_v10 }
 0x430   :  { %v1890_v43 = vpop.f32.mrf.mxu1 }
 0x436   :  { %v1876_v60 = vpop.f32.mrf.mxu0  ;;  %v1862_v55 = vpop.f32.mrf.mxu3 }
 0x437   :  { %v1877_v52 = vadd.f32 %v1876_v60, %v1676_v42 }
 0x438   :  { %v1892_v45 = vpop.f32.mrf.mxu1 }
 0x439   :  { %v1891_v40 = vadd.f32 %v1890_v43, %v1877_v52 }
 0x43b   :  { %v1896_v47 = vadd.f32 %v1891_v40, %v1626_v6 }
 0x43c   :  { %v1848_v59 = vpop.f32.mrf.mxu2 }
 0x43d   :  { %v1849_v51 = vadd.f32 %v1848_v59, %v1675_v46  ;;  %v1900_v54 = vmax.f32 %v1896_v47, 0.0 }
 0x43e   :  { %v1878_v44 = vpop.f32.mrf.mxu0  ;;  %v1864_v58 = vpop.f32.mrf.mxu3 }
 0x43f   :  { %v1879_v57 = vadd.f32 %v1878_v44, %v1676_v42  ;;  %v1863_v0 = vadd.f32 %v1862_v55, %v1849_v51  ;;  %v3678_v51 = vld [vmem:[%s4117_s6] ss:$0 sm:$0xff] }
 0x441   :  { %v1893_v49 = vadd.f32 %v1892_v45, %v1879_v57  ;;  %v1895_v63 = vadd.f32 %v1863_v0, %v1625_v2  ;;  %v3649_v2 = vld [vmem:[#allocation12 + $0x28] sm:$0xff] }
 0x442   :  { %2321 = vmatpush.bf16.msrb.mxu2 %v3649_v2 }
 0x443   :  { %v1898_v38 = vadd.f32 %v1893_v49, %v1628_v7  ;;  %v1899_v35 = vmax.f32 %v1895_v63, 0.0  ;;  %v3657_v7 = vld [vmem:[#allocation12 + $0x68] sm:$0xff] }
 0x444   :  { %v1850_v50 = vpop.f32.mrf.mxu2  ;;  %2335 = vmatpush.bf16.msrb.mxu3 %v3657_v7 }
 0x445   :  { %v1902_v62 = vmax.f32 %v1898_v38, 0.0  ;;  %v1851_v5 = vadd.f32 %v1850_v50, %v1675_v46 }
 0x446   :  { %2322 = vmatpush.bf16.msrb.mxu2 %v3648_v41 }
 0x447   :  { %v1912_v53 = vpack.c.bf16 %v1902_v62, %v1900_v54  ;;  %v1865_v1 = vadd.f32 %v1864_v58, %v1851_v5 }
 0x448   :  { %2336 = vmatpush.bf16.msrb.mxu3 %v3656_v8 }
 0x449   :  { %v1897_v3 = vadd.f32 %v1865_v1, %v1627_v9  ;;  %2135 = vmatmul.bf16.vlgmr.msra.gmra.mxu3 %v1912_v53  ;;  %2163 = vmatmul.bf16.vlgmr.msrb.gmra.mxu1 %v1912_v53  ;;  %v3654_v9 = vld [vmem:[#allocation12 + $0x50] sm:$0xff] }
 0x44a   :  { %2323 = vmatpush.bf16.msrb.mxu2 %v3647_v12 }
 0x44b   :  { %v1901_v6 = vmax.f32 %v1897_v3, 0.0 }
 0x44c   :  { %2337 = vmatpush.bf16.msrb.mxu3 %v3655_v11 }
 0x44d   :  { %v1911_v56 = vpack.c.bf16 %v1901_v6, %v1899_v35 }
 0x44e   :  { %2324 = vmatpush.bf16.msrb.mxu2 %v3646_v4 }
 0x44f   :  { %2121 = vmatmul.bf16.vlgmr.msra.gmra.mxu2 %v1911_v56  ;;  %2149 = vmatmul.bf16.vlgmr.msrb.gmra.mxu0 %v1911_v56 }
 0x450   :  { %2338 = vmatpush.bf16.msrb.mxu3 %v3654_v9 }
 0x452   :  { %2325 = vmatpush.bf16.msrb.mxu2 %v3645_v14 }
 0x454   :  { %2339 = vmatpush.bf16.msrb.mxu3 %v3653_v61 }
 0x456   :  { %2326 = vmatpush.bf16.msrb.mxu2 %v3644_v15 }
 0x458   :  { %2340 = vmatpush.bf16.msrb.mxu3 %v3652_v13 }
 0x4c6   :  { %v2164_v18 = vpop.f32.mrf.mxu1 }
 0x4cc   :  { %v2150_v19 = vpop.f32.mrf.mxu0  ;;  %v2136_v22 = vpop.f32.mrf.mxu3 }
 0x4cd   :  { %v2151_v20 = vadd.f32 %v2150_v19, %v1950_v17 }
 0x4ce   :  { %v2166_v28 = vpop.f32.mrf.mxu1 }
 0x4cf   :  { %v2165_v24 = vadd.f32 %v2164_v18, %v2151_v20 }
 0x4d1   :  { %v2170_v29 = vadd.f32 %v2165_v24, %v1900_v54 }
 0x4d2   :  { %v2122_v23 = vpop.f32.mrf.mxu2 }
 0x4d3   :  { %v2123_v26 = vadd.f32 %v2122_v23, %v1949_v21  ;;  %v2174_v34 = vmax.f32 %v2170_v29, 0.0 }
 0x4d4   :  { %v2152_v25 = vpop.f32.mrf.mxu0  ;;  %v2138_v39 = vpop.f32.mrf.mxu3 }
 0x4d5   :  { %v2153_v27 = vadd.f32 %v2152_v25, %v1950_v17  ;;  %v2137_v31 = vadd.f32 %v2136_v22, %v2123_v26 }
 0x4d7   :  { %v2167_v30 = vadd.f32 %v2166_v28, %v2153_v27  ;;  %v2169_v42 = vadd.f32 %v2137_v31, %v1899_v35 }
 0x4d9   :  { %v2172_v32 = vadd.f32 %v2167_v30, %v1902_v62  ;;  %v2173_v46 = vmax.f32 %v2169_v42, 0.0 }
 0x4da   :  { %v2124_v33 = vpop.f32.mrf.mxu2 }
 0x4db   :  { %v2176_v36 = vmax.f32 %v2172_v32, 0.0  ;;  %v2125_v37 = vadd.f32 %v2124_v33, %v1949_v21 }
 0x4dd   :  { %v2186_v43 = vpack.c.bf16 %v2176_v36, %v2174_v34  ;;  %v2139_v60 = vadd.f32 %v2138_v39, %v2125_v37 }
 0x4df   :  { %v2171_v52 = vadd.f32 %v2139_v60, %v1901_v6  ;;  %2341 = vmatmul.bf16.vlgmr.msrb.gmra.mxu3 %v2186_v43 }
 0x4e1   :  { %v2175_v55 = vmax.f32 %v2171_v52, 0.0 }
 0x4e3   :  { %v2185_v59 = vpack.c.bf16 %v2175_v55, %v2173_v46 }
 0x4e5   :  { %2327 = vmatmul.bf16.vlgmr.msrb.gmra.mxu2 %v2185_v59 }
 0x562   :  { %v2342_v40 = vpop.f32.mrf.mxu3 }
 0x568   :  { %v2328_v44 = vpop.f32.mrf.mxu2 }
 0x569   :  { %v2329_v57 = vadd.f32 %v3678_v51, %v2328_v44 }
 0x56a   :  { %v2344_v0 = vpop.f32.mrf.mxu3 }
 0x56b   :  { %v2343_v47 = vadd.f32 %v2342_v40, %v2329_v57 }
 0x56d   :  { %v2347_v50 = vmax.f32 %v2343_v47, 0.0 }
 0x570   :  { %v2330_v45 = vpop.f32.mrf.mxu2 }
 0x571   :  { %v2331_v49 = vadd.f32 %v3678_v51, %v2330_v45 }
 0x573   :  { %v2345_v38 = vadd.f32 %v2344_v0, %v2331_v49 }
 0x575   :  { %v2348_v54 = vmax.f32 %v2345_v38, 0.0 }
 0x577   :  { %v3663_v62 = vpack.c.bf16 %v2348_v54, %v2347_v50 }
 0x579   :  { %3664 = vst [vmem:[#allocation14] sm:$0xff] %v3663_v62  }
 0x57a   :  { %2365 = dma.vmem_to_hbm [thread:$0]  %s2358_s11, 128, %s2360_s14, [#allocation5], %s3862_s19, %s3862_s19, %s3863_s20  }
 0x57b   :  { %3855 = dma.done.wait [#allocation5], 128  }
 0x57c   :  { %3856 = vsyncadd [#allocation5], 4294967168 }
 0x57d   :  { %2370 = vsyncpa [#allocation4], 1 }
 0x57e   :  { %2371 = vsyncpa [#allocation7], 1 }
 0x57f   :  { %2372 = vsyncpa [#allocation10], 1 }
 0x580   :  { %2373 = vsyncpa [#allocation13], 1 }
 0x581   :  { %2374 = vsyncpa [#allocation5], 1 }

</bundles_post_ra>
